<compile_context>
chip_gen: v5e
topology: v5e:2x2
jax: 0.10.0
libtpu: 0.0.40
codegen_flags: <defaults>
</compile_context>

<pallas_src>
import numpy as np
import jax
import jax.numpy as jnp
from jax.experimental import pallas as pl
from jax.experimental.pallas import tpu as pltpu

HIDDEN = 768      # BERT hidden size (fixed by the module)
C = 256           # Linear output channels
POOL_OUT = 64     # AdaptiveAvgPool1d target length
RED = 16          # SE reduction -> 256 // 16 = 16


def _adaptive_pool_matrix(L: int, out: int) -> np.ndarray:
    """Exact nn.AdaptiveAvgPool1d(out) as an (L, out) matrix: pooled = seq @ P."""
    P = np.zeros((L, out), dtype=np.float32)
    for j in range(out):
        start = (j * L) // out
        end = -(-((j + 1) * L) // out)  # ceil
        P[start:end, j] = 1.0 / (end - start)
    return P


def _adaptive_pool_matrix_ext(L: int, out: int) -> np.ndarray:
    """(out+1, L): rows 0..out-1 = pool matrix^T, row `out` = channel-mean row (mean of the
    pool rows), so the SE channel statistic falls out of the same matmul."""
    pt = _adaptive_pool_matrix(L, out).T                      # (out, L)
    mean_row = pt.mean(axis=0, keepdims=True)                 # (1, L)
    return np.concatenate([pt, mean_row], axis=0).astype(np.float32)


def _bert_se_kernel(x_ref, w1t_ref, b1_ref, ptx_ref, wfc1t_ref, wfc2t_ref, o_ref):
    TB = x_ref.shape[0]

    ptx = ptx_ref[...]        # (65, L)   bf16, resident
    w1t = w1t_ref[...]        # (768, 256) bf16, resident
    b1 = b1_ref[...]          # (1, 256)  f32
    wfc1t = wfc1t_ref[...]    # (256, 16) f32
    wfc2t = wfc2t_ref[...]    # (16, 256) f32

    # Per-example fused chain; TB is a small static constant, so a Python unroll is fine and
    # every iteration ends with its store, bounding live ranges to one (65, 256) f32 tile.
    for t in range(TB):
        xt = x_ref[t].astype(jnp.bfloat16)                                   # (L, 768) bf16

        # Pool-first: (65, L) @ (L, 768).  Rows 0..63 = adaptive-pooled sequence positions,
        # row 64 = channel-mean row (SE avg-pool statistic), all from one MXU op.
        px = jnp.dot(ptx, xt, preferred_element_type=jnp.float32)            # (65, 768) f32

        # nn.Linear(768, 256) applied to the 65 pooled rows.  Adding b1 here is exact because
        # each pool row (and the mean row) sums to 1, so the bias commutes with pooling.
        hp = jnp.dot(px.astype(jnp.bfloat16), w1t,
                     preferred_element_type=jnp.float32) + b1                # (65, 256) f32

        pooled = hp[:POOL_OUT]                                               # (64, 256)
        ch = hp[POOL_OUT:POOL_OUT + 1]                                       # (1, 256)

        # SEBlock fc: Linear(256,16,no bias) -> ReLU -> Linear(16,256,no bias) -> Sigmoid.
        s = jnp.dot(ch, wfc1t, preferred_element_type=jnp.float32)           # (1, 16)
        s = jnp.maximum(s, 0.0)
        s = jnp.dot(s, wfc2t, preferred_element_type=jnp.float32)            # (1, 256)
        scale = jax.nn.sigmoid(s)

        # x * y.expand_as(x): channel-wise rescale; lane-dense (64, 256) store per example.
        o_ref[t] = (pooled * scale).astype(o_ref.dtype)


def bert_processor(x, w1, b1, wfc1, wfc2, *, tb=None, channels_last=False):
    """x: (B, L, 768); PyTorch-layout params:
       w1 (256, 768), b1 (256,), wfc1 (16, 256), wfc2 (256, 16).
       Returns (B, 256, 64, 1) f32 (NCHW, matching the PyTorch module), or (B, 64, 256) if
       channels_last=True (skips the wrapper-side transpose)."""
    x = jnp.asarray(x)
    B, L, D = x.shape
    assert D == HIDDEN

    if tb is None:
        # VMEM budget: keep the x block <= ~4 MiB (double-buffered -> 8 MiB), and keep the
        # grid >= 8 steps when B allows so each v7x TensorCore gets >= 2 pipelined steps
        # (and single-TC v5e/v6e always has DMA/compute overlap).
        itemsize = jnp.dtype(x.dtype).itemsize
        tb_budget = max(1, (4 << 20) // (L * HIDDEN * itemsize))
        tb_grid = max(1, pl.cdiv(B, 8))
        tb = max(1, min(tb_budget, tb_grid, 8, B))
    nblk = pl.cdiv(B, tb)
    Bp = nblk * tb
    if Bp != B:
        x = jnp.pad(x, ((0, Bp - B), (0, 0), (0, 0)))   # only when B % tb != 0

    # Small operand prep (layout plumbing + bf16 cast of the matmul weights) in the wrapper.
    w1t = jnp.asarray(w1, jnp.float32).T.astype(jnp.bfloat16)               # (768, 256) bf16
    b1_row = jnp.asarray(b1, jnp.float32)[None, :]                          # (1, 256)  f32
    ptx = jnp.asarray(_adaptive_pool_matrix_ext(L, POOL_OUT), jnp.bfloat16)  # (65, L)   bf16
    wfc1t = jnp.asarray(wfc1, jnp.float32).T                                # (256, 16) f32
    wfc2t = jnp.asarray(wfc2, jnp.float32).T                                # (16, 256) f32

    out = pl.pallas_call(
        _bert_se_kernel,
        out_shape=jax.ShapeDtypeStruct((Bp, POOL_OUT, C), jnp.float32),
        grid_spec=pltpu.PrefetchScalarGridSpec(
            num_scalar_prefetch=0,
            grid=(nblk,),
            in_specs=[
                pl.BlockSpec((tb, L, HIDDEN), lambda b: (b, 0, 0)),    # x (native dtype)
                pl.BlockSpec((HIDDEN, C), lambda b: (0, 0)),           # W1^T (resident)
                pl.BlockSpec((1, C), lambda b: (0, 0)),                # b1
                pl.BlockSpec((POOL_OUT + 1, L), lambda b: (0, 0)),     # pool^T + mean row
                pl.BlockSpec((C, RED), lambda b: (0, 0)),              # fc1^T
                pl.BlockSpec((RED, C), lambda b: (0, 0)),              # fc2^T
            ],
            out_specs=pl.BlockSpec((tb, POOL_OUT, C), lambda b: (b, 0, 0)),  # lane-dense
        ),
        compiler_params=pltpu.CompilerParams(
            dimension_semantics=("parallel",),
            vmem_limit_bytes=32 * 1024 * 1024),
    )(x, w1t, b1_row, ptx, wfc1t, wfc2t)

    out = out[:B]                                   # drop batch padding (if any)
    if channels_last:
        return out                                  # (B, 64, 256)
    # NCHW permute + unsqueeze(-1): (B, 64, 256) -> (B, 256, 64, 1) to match PyTorch layout.
    return jnp.transpose(out, (0, 2, 1))[..., None]


def _reference(x, w1, b1, wfc1, wfc2):
    """Pure-JAX f32 reference mirroring the PyTorch forward pass."""
    B, L, _ = x.shape
    h = x @ w1.T + b1                                       # (B, L, 256)
    h = jnp.transpose(h, (0, 2, 1))                         # (B, 256, L)
    P = jnp.asarray(_adaptive_pool_matrix(L, POOL_OUT))     # (L, 64)
    pooled = jnp.einsum('bcl,lj->bcj', h, P)                # (B, 256, 64)
    x4 = pooled[..., None]                                  # (B, 256, 64, 1)
    ch = jnp.mean(x4, axis=(2, 3))                          # (B, 256)  (SE avg_pool)
    s = jnp.maximum(ch @ wfc1.T, 0.0) @ wfc2.T              # (B, 256)
    scale = jax.nn.sigmoid(s)[:, :, None, None]             # (B, 256, 1, 1)
    return x4 * scale


if __name__ == "__main__":
    key = jax.random.PRNGKey(0)
    kx, kw1, kb1, kf1, kf2, kx2 = jax.random.split(key, 6)

    # Deterministic synthetic parameters (PyTorch layouts)
    w1 = jax.random.normal(kw1, (C, HIDDEN), jnp.float32) * 0.02    # Linear(768,256).weight
    b1 = jax.random.normal(kb1, (C,), jnp.float32) * 0.02
    wfc1 = jax.random.normal(kf1, (RED, C), jnp.float32) * 0.05     # Linear(256,16,bias=False)
    wfc2 = jax.random.normal(kf2, (C, RED), jnp.float32) * 0.05     # Linear(16,256,bias=False)

    # Case 1: small demo shape, default tb (tb=1, grid=2).
    B, L = 2, 128
    x = jax.random.normal(kx, (B, L, HIDDEN), jnp.float32)
    out = jax.block_until_ready(bert_processor(x, w1, b1, wfc1, wfc2))
    ref = _reference(x, w1, b1, wfc1, wfc2)
    # Tolerance relaxed for bf16 (f32-accumulated) MXU operands.
    np.testing.assert_allclose(np.asarray(out), np.asarray(ref), rtol=2e-2, atol=2e-2)
    assert out.shape == (B, C, POOL_OUT, 1)

    # Case 2: exercise the multi-example (TB > 1) block path and a non-multiple-of-16 L.
    B2, L2 = 4, 96
    x2 = jax.random.normal(kx2, (B2, L2, HIDDEN), jnp.float32)
    out2 = jax.block_until_ready(bert_processor(x2, w1, b1, wfc1, wfc2, tb=2))
    ref2 = _reference(x2, w1, b1, wfc1, wfc2)
    np.testing.assert_allclose(np.asarray(out2), np.asarray(ref2), rtol=2e-2, atol=2e-2)
    assert out2.shape == (B2, C, POOL_OUT, 1)

    print("KERNEL_OK")
</pallas_src>

<mosaic_0001>
module attributes {stable_mosaic.version = 11 : i64} {
  func.func @_bert_se_kernel(%arg0: i32, %arg1: memref<1x128x768xf32, #tpu.memory_space<vmem>>, %arg2: memref<768x256xbf16, #tpu.memory_space<vmem>>, %arg3: memref<1x256xf32, #tpu.memory_space<vmem>>, %arg4: memref<65x128xbf16, #tpu.memory_space<vmem>>, %arg5: memref<256x16xf32, #tpu.memory_space<vmem>>, %arg6: memref<16x256xf32, #tpu.memory_space<vmem>>, %arg7: memref<1x64x256xf32, #tpu.memory_space<vmem>>) attributes {dimension_semantics = [#tpu.dimension_semantics<parallel>], iteration_bounds = array<i64: 2>, scalar_prefetch = 0 : i64, scratch_operands = 0 : i64, tpu.core_type = #tpu.core_type<tc>, window_params = [{transform_indices = @transform_0, window_bounds = array<i64: 1, 128, 768>}, {pipeline_mode = #tpu.pipeline_mode<synchronous>, transform_indices = @transform_1, window_bounds = array<i64: 768, 256>}, {pipeline_mode = #tpu.pipeline_mode<synchronous>, transform_indices = @transform_2, window_bounds = array<i64: 1, 256>}, {pipeline_mode = #tpu.pipeline_mode<synchronous>, transform_indices = @transform_3, window_bounds = array<i64: 65, 128>}, {pipeline_mode = #tpu.pipeline_mode<synchronous>, transform_indices = @transform_4, window_bounds = array<i64: 256, 16>}, {pipeline_mode = #tpu.pipeline_mode<synchronous>, transform_indices = @transform_5, window_bounds = array<i64: 16, 256>}, {transform_indices = @transform_6, window_bounds = array<i64: 1, 64, 256>}]} {
    %c0 = arith.constant 0 : index
    %c0_0 = arith.constant 0 : index
    %0 = vector.load %arg4[%c0, %c0_0] : memref<65x128xbf16, #tpu.memory_space<vmem>>, vector<65x128xbf16>
    %c0_1 = arith.constant 0 : index
    %c0_2 = arith.constant 0 : index
    %1 = vector.load %arg2[%c0_1, %c0_2] : memref<768x256xbf16, #tpu.memory_space<vmem>>, vector<768x256xbf16>
    %c0_3 = arith.constant 0 : index
    %c0_4 = arith.constant 0 : index
    %2 = vector.load %arg3[%c0_3, %c0_4] : memref<1x256xf32, #tpu.memory_space<vmem>>, vector<1x256xf32>
    %c0_5 = arith.constant 0 : index
    %c0_6 = arith.constant 0 : index
    %3 = vector.load %arg5[%c0_5, %c0_6] : memref<256x16xf32, #tpu.memory_space<vmem>>, vector<256x16xf32>
    %c0_7 = arith.constant 0 : index
    %c0_8 = arith.constant 0 : index
    %4 = vector.load %arg6[%c0_7, %c0_8] : memref<16x256xf32, #tpu.memory_space<vmem>>, vector<16x256xf32>
    %c0_9 = arith.constant 0 : index
    %c0_10 = arith.constant 0 : index
    %c0_11 = arith.constant 0 : index
    %5 = vector.load %arg1[%c0_9, %c0_10, %c0_11] : memref<1x128x768xf32, #tpu.memory_space<vmem>>, vector<1x128x768xf32>
    %6 = vector.shape_cast %5 : vector<1x128x768xf32> to vector<128x768xf32>
    %7 = arith.truncf %6 : vector<128x768xf32> to vector<128x768xbf16>
    %cst = arith.constant dense<0.000000e+00> : vector<65x768xf32>
    %8 = tpu.matmul %0, %7, %cst {dimension_numbers = #tpu.dot_dimension_numbers<[1], [0], [0], [1], [0, 0, 1, 1], [], []>} : vector<65x128xbf16>, vector<128x768xbf16>, vector<65x768xf32> -> vector<65x768xf32>
    %9 = arith.truncf %8 : vector<65x768xf32> to vector<65x768xbf16>
    %cst_12 = arith.constant dense<0.000000e+00> : vector<65x256xf32>
    %10 = tpu.matmul %9, %1, %cst_12 {dimension_numbers = #tpu.dot_dimension_numbers<[1], [0], [0], [1], [0, 0, 1, 1], [], []>} : vector<65x768xbf16>, vector<768x256xbf16>, vector<65x256xf32> -> vector<65x256xf32>
    %11 = vector.broadcast %2 : vector<1x256xf32> to vector<65x256xf32>
    %12 = arith.addf %10, %11 : vector<65x256xf32>
    %13 = vector.extract_strided_slice %12 {offsets = [0, 0], sizes = [64, 256], strides = [1, 1]} : vector<65x256xf32> to vector<64x256xf32>
    %14 = vector.extract_strided_slice %12 {offsets = [64, 0], sizes = [1, 256], strides = [1, 1]} : vector<65x256xf32> to vector<1x256xf32>
    %cst_13 = arith.constant dense<0.000000e+00> : vector<1x16xf32>
    %15 = tpu.matmul %14, %3, %cst_13 {dimension_numbers = #tpu.dot_dimension_numbers<[1], [0], [0], [1], [0, 0, 1, 1], [], []>} : vector<1x256xf32>, vector<256x16xf32>, vector<1x16xf32> -> vector<1x16xf32>
    %cst_14 = arith.constant 0.000000e+00 : f32
    %16 = vector.broadcast %cst_14 : f32 to vector<1x16xf32>
    %17 = arith.maximumf %15, %16 : vector<1x16xf32>
    %cst_15 = arith.constant dense<0.000000e+00> : vector<1x256xf32>
    %18 = tpu.matmul %17, %4, %cst_15 {dimension_numbers = #tpu.dot_dimension_numbers<[1], [0], [0], [1], [0, 0, 1, 1], [], []>} : vector<1x16xf32>, vector<16x256xf32>, vector<1x256xf32> -> vector<1x256xf32>
    %19 = arith.negf %18 : vector<1x256xf32>
    %20 = math.exp %19 : vector<1x256xf32>
    %cst_16 = arith.constant 1.000000e+00 : f32
    %21 = vector.broadcast %cst_16 : f32 to vector<1x256xf32>
    %22 = arith.addf %21, %20 : vector<1x256xf32>
    %23 = arith.divf %21, %22 : vector<1x256xf32>
    %24 = vector.broadcast %23 : vector<1x256xf32> to vector<64x256xf32>
    %25 = arith.mulf %13, %24 : vector<64x256xf32>
    %c0_17 = arith.constant 0 : index
    %c0_18 = arith.constant 0 : index
    %c0_19 = arith.constant 0 : index
    %26 = vector.load %arg7[%c0_17, %c0_18, %c0_19] : memref<1x64x256xf32, #tpu.memory_space<vmem>>, vector<1x64x256xf32>
    %27 = vector.shape_cast %26 : vector<1x64x256xf32> to vector<64x256xf32>
    %28 = vector.shape_cast %25 : vector<64x256xf32> to vector<1x64x256xf32>
    tpu.vector_store %arg7[%c0_17, %c0_18, %c0_19], %28 {strides = array<i32>} : memref<1x64x256xf32, #tpu.memory_space<vmem>>, vector<1x64x256xf32>,
    return
  }
  func.func @transform_0(%arg0: i32) -> (i32, i32, i32) {
    %c0_i32 = arith.constant 0 : i32
    %c0_i32_0 = arith.constant 0 : i32
    %c0_i32_1 = arith.constant 0 : i32
    return %arg0, %c0_i32, %c0_i32_0 : i32, i32, i32
  }
  func.func @transform_1(%arg0: i32) -> (i32, i32) {
    %c0_i32 = arith.constant 0 : i32
    %c0_i32_0 = arith.constant 0 : i32
    %c0_i32_1 = arith.constant 0 : i32
    return %c0_i32, %c0_i32_0 : i32, i32
  }
  func.func @transform_2(%arg0: i32) -> (i32, i32) {
    %c0_i32 = arith.constant 0 : i32
    %c0_i32_0 = arith.constant 0 : i32
    %c0_i32_1 = arith.constant 0 : i32
    return %c0_i32, %c0_i32_0 : i32, i32
  }
  func.func @transform_3(%arg0: i32) -> (i32, i32) {
    %c0_i32 = arith.constant 0 : i32
    %c0_i32_0 = arith.constant 0 : i32
    %c0_i32_1 = arith.constant 0 : i32
    return %c0_i32, %c0_i32_0 : i32, i32
  }
  func.func @transform_4(%arg0: i32) -> (i32, i32) {
    %c0_i32 = arith.constant 0 : i32
    %c0_i32_0 = arith.constant 0 : i32
    %c0_i32_1 = arith.constant 0 : i32
    return %c0_i32, %c0_i32_0 : i32, i32
  }
  func.func @transform_5(%arg0: i32) -> (i32, i32) {
    %c0_i32 = arith.constant 0 : i32
    %c0_i32_0 = arith.constant 0 : i32
    %c0_i32_1 = arith.constant 0 : i32
    return %c0_i32, %c0_i32_0 : i32, i32
  }
  func.func @transform_6(%arg0: i32) -> (i32, i32, i32) {
    %c0_i32 = arith.constant 0 : i32
    %c0_i32_0 = arith.constant 0 : i32
    %c0_i32_1 = arith.constant 0 : i32
    return %arg0, %c0_i32, %c0_i32_0 : i32, i32, i32
  }
}

</mosaic_0001>

<bundles_post_ra>
// kernel: tpu_custom_call.1
= control target key start
LH: loop header
LB: loop body
LE: loop exit
PB: predicated region body
PF: predicated region fallthrough
CT: control target
= control target key end

     0   :  { %s3472_s0 = inlined_call_operand.hbm [shape: f32[2,128,768], index: 0, kind: input, shape index: {}]   ;;  %s3473_s1 = inlined_call_operand.hbm [shape: bf16[768,256], index: 1, kind: input, shape index: {}]   ;;  %s3474_s2 = inlined_call_operand.vmem [shape: f32[1,256], index: 2, kind: input, shape index: {}]   ;;  %s3475_s3 = inlined_call_operand.vmem [shape: bf16[65,128], index: 3, kind: input, shape index: {}]   ;;  %s3476_s4 = inlined_call_operand.vmem [shape: f32[256,16], index: 4, kind: input, shape index: {}]   ;;  %s3477_s5 = inlined_call_operand.vmem [shape: f32[16,256], index: 5, kind: input, shape index: {}]   ;;  %s3478_s6 = inlined_call_operand.hbm [shape: f32[2,64,256], index: 6, kind: output, shape index: {}]  }
   0x1   :  { %3479 = sst [smem:[#allocation12_spill]] %s3473_s1 }
   0x2   :  { %11 = vsyncpa [#allocation3], 0 }
   0x3   :  { %13 = vsyncpa [#allocation3 + $0x1], 0 }
   0x4   :  { %14 = vsyncpa [#allocation6], 0 }
   0x5   :  { %15 = vsyncpa [#allocation4], 0 }
   0x6   :  { %17 = vsyncpa [#allocation4 + $0x1], 0  ;;  %s2750_s21 = smov 0   ;;  %s2752_s22 = smov 0  }
   0x7   :  { %s2754_s23 = smov 0   ;;  %s2756_s24 = smov 0  }
   0x8 LB: > { %s2771_s25 = sadd.s32 4294967295, %s2706_s24   ;;  %s1968_s26 = sadd.s32 4294967294, %s2706_s24   ;;  %s2706_s24 = sphi %s2756_s24, %s3492_s24   ;;  %s2702_s23 = sphi %s2754_s23, %s3491_s23   ;;  %s2698_s22 = sphi %s2752_s22, %s3490_s22   ;;  %s2694_s21 = sphi %s2750_s21, %s3489_s21  }
   0x9   : > { %p43_p0 = scmp.ne.s32.totalorder %s2698_s22, %s2694_s21  ;;  %p44_p1 = scmp.eq.s32.totalorder %s2771_s25, 0 }
   0xa   : > { %p172_p2 = scmp.eq.s32.totalorder %s2771_s25, 1  ;;  %p178_p3 = scmp.eq.s32.totalorder %s1968_s26, 1 }
   0xb   : > { %p2780_p4 = por %p44_p1, %p43_p0  ;;  %p1969_p5 = scmp.ge.s32.totalorder %s2706_s24, 1 }
   0xc   : > { %p2785_p6 = por %p178_p3, %p43_p0  ;;  %p185_p7 = scmp.lt.s32.totalorder %s2706_s24, 3 }
   0xd   : > { %s3482_s1 = sld [smem:[#allocation12_spill]]  ;;  %s2708_s9 = smov [#allocation5]  }
   0xe   : > { %p2793_p8 = pnand %p1969_p5, %p185_p7  ;;  %s198_s10 = sshll.u32 %s2708_s9, 4  ;;  %s199_s10 = int_to_ptr.vmem [resolvable:$true] %s198_s10 }
   0xf   : > { %s2803_s11 = sadd.s32 1, %s2706_s24   ;;  %s2709_s12 = smov 128  }
  0x10   : > { %p2513_p9 = pneg %p2793_p8  ;;  %s2710_s13 = smov 8  }
  0x11   : > { %s27_s14 = ssub.s32 %s2706_s24, %s2803_s11  ;;  %s30_s15 = sadd.s32 1, %s2702_s23 }
  0x12   : > { %p2514_p10 = pnand %p2513_p9, %p44_p1  ;;  %p28_p12 = scmp.eq.s32.totalorder %s27_s14, 0 }
  0x13   : > { %s196_s7 = sshll.u32 %s3482_s1, 4  ;;  %p37_p13 = scmp.ne.s32.totalorder %s2702_s23, %s2698_s22  ;;  %s197_s7 = int_to_ptr.hbm [resolvable:$true] %s196_s7 }
  0x14   : > { %2516 = dma.hbm_to_vmem [thread:$0]  (!%p2514_p10), %s197_s7, 12288, %s199_s10, [#allocation6], %s2709_s12, %s2709_s12, %s2710_s13  }
  0x15   : > { %p38_p0 = scmp.eq.s32.totalorder %s2706_s24, 0  ;;  %p2526_p3 = scmp.lt.s32.totalorder %s2706_s24, 2 }
  0x16   : > { %s2813_s16 = scalar_select %p28_p12, %s2702_s23, %s30_s15  }
  0x17   : > { %p39_p5 = por %p38_p0, %p37_p13  ;;  %p2817_p7 = por %p172_p2, %p37_p13 }
  0x18   : > { %3484 = sst [smem:[#allocation11_spill]] %s2813_s16  ;;  %s224_s18 = sand.u32 1, %s2702_s23  }
  0x19   : > { %s2503_s19 = smul.u32 768, %s2706_s24  ;;  %p2826_p9 = pnand %p2526_p3, %p39_p5 }
  0x1a   : > { %s2502_s20 = smul.u32 768, %s224_s18  ;;  %s225_s13 = scalar_lea.sflag [#allocation3], %s224_s18 }
  0x1b   : > { %s233_s30 = scalar_lea.hbm %s3472_s0, %s2503_s19  ;;  %p2610_p10 = pneg %p2826_p9 }
  0x1c   : > { %s234_s9 = sshll.u32 %s233_s30, 4  ;;  %s228_s10 = scalar_lea.vmem [#allocation2], %s2502_s20  ;;  %s235_s9 = int_to_ptr.hbm [resolvable:$true] %s234_s9 }
  0x1d   : > { %s236_s12 = sshll.u32 %s228_s10, 4  ;;  %s2606_s14 = sshra.s32 %s235_s9, 4  ;;  %s237_s12 = int_to_ptr.vmem [resolvable:$true] %s236_s12  ;;  %s2607_s14 = int_to_ptr.hbm [resolvable:$true] %s2606_s14 }
  0x1e   : > { %s2608_s15 = scalar_lea.hbm %s2607_s14, 768  ;;  %s2613_s29 = scalar_lea.hbm %s3472_s0, 1536 }
  0x1f   : > { %p2609_p2 = scmp.ne.s32.totalorder %s2607_s14, %s2608_s15  ;;  %p2614_p0 = scmp.lt.s32.totalorder %s2607_s14, %s3472_s0 }
  0x20   : > { %p2615_p3 = scmp.lt.s32.totalorder %s2613_s29, %s2608_s15 }
  0x21   : > { %p2611_p12 = pnand %p2610_p10, %p2609_p2 }
  0x22   : > { %p2616_p5 = por %p2615_p3, %p2614_p0 }
  0x23   : > { %p2612_p13 = pneg %p2611_p12 }
  0x25   : > { %p2617_p11 = pnand %p2616_p5, %p2612_p13 }
  0x27   : > { %2620 = shalt.err (!%p2617_p11)
}
  0x28   : > { %s2711_s18 = smov 768   ;;  %s2712_s20 = smov 48  }
  0x29   : > { %2520 = dma.hbm_to_vmem [thread:$0]  (!%p2826_p9), %s235_s9, 12288, %s237_s12, %s225_s13, %s2711_s18, %s2711_s18, %s2712_s20  }
  0x2a   : > { %248 = sbr.rel (%p2793_p8) target bundleno = 932 (0x3a4), region = 44  ;;  %s2843_s30 = sand.u32 (!%p2793_p8), 1, %s2698_s22  }
  0x2b   : > { %s2504_s1 = smul.u32 (!%p2793_p8), 768, %s2843_s30  ;;  %s251_s16 = scalar_lea.sflag (!%p2793_p8), [#allocation3], %s2843_s30 }
  0x2d   : > { %s2847_s10 = scalar_lea.vmem (!%p2793_p8), [#allocation2], %s2504_s1 }
  0x2f   : > { %2681 = dma.done.wait (%p2780_p4), %s251_s16, 12288  }
  0x30   : > { %2683 = vsyncadd (%p2780_p4), %s251_s16, 4294955008 }
  0x31   : > { %2685 = dma.done.wait (%p44_p1), [#allocation6], 12288  }
  0x32   : > { %2687 = vsyncadd (%p44_p1), [#allocation6], 4294955008  ;;  %v515_v0 = vld [vmem:[%s2847_s10 + $0x2a0] sm:$0xff]  ;;  %v521_v1 = vld [vmem:[%s2847_s10 + $0x2d0] sm:$0xff]  ;;  %vm1753_vm0 = vcmask 130048   ;;  %s1975_s12 = sshll.u32 %s2843_s30, 7 }
  0x33   : > { %v516_v2 = vld [vmem:[%s2847_s10 + $0x2a8] sm:$0xff]  ;;  %v569_v3 = vpack.c.bf16 %v521_v1, %v515_v0  ;;  %v522_v4 = vld [vmem:[%s2847_s10 + $0x2d8] sm:$0xff]  ;;  %v503_v5 = vld [vmem:[%s2847_s10 + $0x240] sm:$0xff]  ;;  %s3409_s13 = scalar_lea.vmem [#allocation7], %s1975_s12  ;;  %s2485_s14 = sshll.u32 %s2771_s25, 7 }
  0x34   : > { %v509_v6 = vld [vmem:[%s2847_s10 + $0x270] sm:$0xff]  ;;  %v570_v7 = vpack.c.bf16 %v522_v4, %v516_v2  ;;  %v504_v8 = vld [vmem:[%s2847_s10 + $0x248] sm:$0xff]  ;;  %v510_v9 = vld [vmem:[%s2847_s10 + $0x278] sm:$0xff]  ;;  %s1881_s26 = scalar_lea.hbm %s3478_s6, %s2485_s14  ;;  %s1882_s25 = sshll.u32 %s3409_s13, 4  ;;  %s1883_s25 = int_to_ptr.vmem [resolvable:$true] %s1882_s25 }
  0x35   : > { %603 = vmatpush.bf16.msra.mxu0 %v569_v3  ;;  %2486 = vmatpush.bf16.msra.mxu2 %v569_v3  ;;  %v563_v10 = vpack.c.bf16 %v509_v6, %v503_v5  ;;  %v564_v11 = vpack.c.bf16 %v510_v9, %v504_v8  ;;  %v491_v12 = vld [vmem:[%s2847_s10 + $0x1e0] sm:$0xff]  ;;  %v497_v13 = vld [vmem:[%s2847_s10 + $0x210] sm:$0xff]  ;;  %v492_v14 = vld [vmem:[%s2847_s10 + $0x1e8] sm:$0xff]  ;;  %s1884_s29 = sshll.u32 %s1881_s26, 4  ;;  %s1870_s18 = scalar_lea.sflag [#allocation4], %s2843_s30  ;;  %s1885_s29 = int_to_ptr.hbm [resolvable:$true] %s1884_s29 }
  0x36   : > { %636 = vmatpush.bf16.msra.mxu1 %v570_v7  ;;  %2494 = vmatpush.bf16.msra.mxu3 %v570_v7  ;;  %v498_v15 = vld [vmem:[%s2847_s10 + $0x218] sm:$0xff]  ;;  %v557_v16 = vpack.c.bf16 %v497_v13, %v491_v12  ;;  %v479_v18 = vld [vmem:[%s2847_s10 + $0x180] sm:$0xff]  ;;  %v485_v19 = vld [vmem:[%s2847_s10 + $0x1b0] sm:$0xff]  ;;  %s2650_s20 = sshra.s32 %s1885_s29, 4  ;;  %s2656_s27 = scalar_lea.hbm %s3478_s6, 256  ;;  %s2651_s20 = int_to_ptr.hbm [resolvable:$true] %s2650_s20 }
  0x37   : > { %v558_v17 = vpack.c.bf16 %v498_v15, %v492_v14  ;;  %v480_v20 = vld [vmem:[%s2847_s10 + $0x188] sm:$0xff]  ;;  %v486_v21 = vld [vmem:[%s2847_s10 + $0x1b8] sm:$0xff]  ;;  %v551_v22 = vpack.c.bf16 %v485_v19, %v479_v18  ;;  %v467_v24 = vld [vmem:[%s2847_s10 + $0x120] sm:$0xff]  ;;  %s2652_s1 = scalar_lea.hbm %s2651_s20, 128  ;;  %p2657_p11 = scmp.lt.s32.totalorder %s2651_s20, %s3478_s6 }
  0x38   : > { %v552_v23 = vpack.c.bf16 %v486_v21, %v480_v20  ;;  %v473_v25 = vld [vmem:[%s2847_s10 + $0x150] sm:$0xff]  ;;  %v468_v26 = vld [vmem:[%s2847_s10 + $0x128] sm:$0xff]  ;;  %v474_v27 = vld [vmem:[%s2847_s10 + $0x158] sm:$0xff]  ;;  %p2653_p1 = scmp.ne.s32.totalorder %s2651_s20, %s2652_s1  ;;  %p2658_p9 = scmp.lt.s32.totalorder %s2656_s27, %s2652_s1 }
  0x39   : > { %604 = vmatpush.bf16.msra.mxu0 %v563_v10  ;;  %2487 = vmatpush.bf16.msra.mxu2 %v563_v10  ;;  %v545_v28 = vpack.c.bf16 %v473_v25, %v467_v24  ;;  %v546_v29 = vpack.c.bf16 %v474_v27, %v468_v26  ;;  %v455_v30 = vld [vmem:[%s2847_s10 + $0xc0] sm:$0xff]  ;;  %v461_v31 = vld [vmem:[%s2847_s10 + $0xf0] sm:$0xff]  ;;  %v456_v32 = vld [vmem:[%s2847_s10 + $0xc8] sm:$0xff] }
  0x3a   : > { %637 = vmatpush.bf16.msra.mxu1 %v564_v11  ;;  %2495 = vmatpush.bf16.msra.mxu3 %v564_v11  ;;  %v462_v33 = vld [vmem:[%s2847_s10 + $0xf8] sm:$0xff]  ;;  %v539_v34 = vpack.c.bf16 %v461_v31, %v455_v30  ;;  %v443_v36 = vld [vmem:[%s2847_s10 + $0x60] sm:$0xff]  ;;  %v449_v37 = vld [vmem:[%s2847_s10 + $0x90] sm:$0xff]  ;;  %p2654_p4 = pnand %p2653_p1, %p2817_p7  ;;  %p2659_p2 = por %p2658_p9, %p2657_p11 }
  0x3b   : > { %v540_v35 = vpack.c.bf16 %v462_v33, %v456_v32  ;;  %v444_v38 = vld [vmem:[%s2847_s10 + $0x68] sm:$0xff]  ;;  %v450_v39 = vld [vmem:[%s2847_s10 + $0x98] sm:$0xff]  ;;  %v533_v40 = vpack.c.bf16 %v449_v37, %v443_v36  ;;  %v431_v42 = vld [vmem:[%s2847_s10] sm:$0xff] }
  0x3c   : > { %v534_v41 = vpack.c.bf16 %v450_v39, %v444_v38  ;;  %v437_v43 = vld [vmem:[%s2847_s10 + $0x30] sm:$0xff]  ;;  %v432_v44 = vld [vmem:[%s2847_s10 + $0x8] sm:$0xff]  ;;  %v438_v45 = vld [vmem:[%s2847_s10 + $0x38] sm:$0xff]  ;;  %p2655_p8 = pneg %p2654_p4 }
  0x3d   : > { %605 = vmatpush.bf16.msra.mxu0 %v557_v16  ;;  %2488 = vmatpush.bf16.msra.mxu2 %v557_v16  ;;  %v517_v46 = vld [vmem:[%s2847_s10 + $0x2b0] sm:$0xff]  ;;  %v523_v47 = vld [vmem:[%s2847_s10 + $0x2e0] sm:$0xff]  ;;  %v518_v48 = vld [vmem:[%s2847_s10 + $0x2b8] sm:$0xff]  ;;  %v527_v50 = vpack.c.bf16 %v437_v43, %v431_v42  ;;  %v528_v51 = vpack.c.bf16 %v438_v45, %v432_v44 }
  0x3e   : > { %638 = vmatpush.bf16.msra.mxu1 %v558_v17  ;;  %2496 = vmatpush.bf16.msra.mxu3 %v558_v17  ;;  %v524_v49 = vld [vmem:[%s2847_s10 + $0x2e8] sm:$0xff]  ;;  %v2896_v52 = vld [vmem:[%s3475_s3] sm:$0xff]  ;;  %v2901_v53 = vld [vmem:[%s3475_s3 + $0x18] sm:$0xff]  ;;  %v571_v54 = vpack.c.bf16 %v523_v47, %v517_v46  ;;  %p2660_p10 = pnand %p2659_p2, %p2655_p8 }
  0x3f   : > { %v572_v55 = vpack.c.bf16 %v524_v49, %v518_v48  ;;  %v505_v56 = vld [vmem:[%s2847_s10 + $0x250] sm:$0xff]  ;;  %v511_v57 = vld [vmem:[%s2847_s10 + $0x280] sm:$0xff]  ;;  %v506_v58 = vld [vmem:[%s2847_s10 + $0x258] sm:$0xff] }
  0x40   : > { %v512_v59 = vld [vmem:[%s2847_s10 + $0x288] sm:$0xff]  ;;  %v565_v60 = vpack.c.bf16 %v511_v57, %v505_v56  ;;  %v493_v62 = vld [vmem:[%s2847_s10 + $0x1f0] sm:$0xff]  ;;  %v499_v63 = vld [vmem:[%s2847_s10 + $0x220] sm:$0xff] }
  0x41   : > { %606 = vmatpush.bf16.msra.mxu0 %v551_v22  ;;  %2489 = vmatpush.bf16.msra.mxu2 %v551_v22  ;;  %v566_v61 = vpack.c.bf16 %v512_v59, %v506_v58  ;;  %v494_v0 = vld [vmem:[%s2847_s10 + $0x1f8] sm:$0xff]  ;;  %v500_v1 = vld [vmem:[%s2847_s10 + $0x228] sm:$0xff]  ;;  %v519_v2 = vld [vmem:[%s2847_s10 + $0x2c0] sm:$0xff]  ;;  %v559_v5 = vpack.c.bf16 %v499_v63, %v493_v62 }
  0x42   : > { %639 = vmatpush.bf16.msra.mxu1 %v552_v23  ;;  %2497 = vmatpush.bf16.msra.mxu3 %v552_v23  ;;  %v525_v3 = vld [vmem:[%s2847_s10 + $0x2f0] sm:$0xff]  ;;  %v560_v6 = vpack.c.bf16 %v500_v1, %v494_v0  ;;  %v487_v8 = vld [vmem:[%s2847_s10 + $0x1c0] sm:$0xff]  ;;  %v482_v9 = vld [vmem:[%s2847_s10 + $0x198] sm:$0xff] }
  0x43   : > { %v573_v4 = vpack.c.bf16 %v525_v3, %v519_v2  ;;  %v481_v7 = vld [vmem:[%s2847_s10 + $0x190] sm:$0xff]  ;;  %v488_v10 = vld [vmem:[%s2847_s10 + $0x1c8] sm:$0xff]  ;;  %v297_v11 = vld [vmem:[%s3475_s3 + $0x20] sm:$0x1] }
  0x44   : > { %v553_v12 = vpack.c.bf16 %v487_v8, %v481_v7  ;;  %v554_v13 = vpack.c.bf16 %v488_v10, %v482_v9  ;;  %v469_v14 = vld [vmem:[%s2847_s10 + $0x130] sm:$0xff]  ;;  %v592_v15 = vunpack.c.l.b16 %v297_v11  ;;  %v475_v16 = vld [vmem:[%s2847_s10 + $0x160] sm:$0xff]  ;;  %v470_v17 = vld [vmem:[%s2847_s10 + $0x138] sm:$0xff] }
  0x45   : > { %607 = vmatpush.bf16.msra.mxu0 %v545_v28  ;;  %2490 = vmatpush.bf16.msra.mxu2 %v545_v28  ;;  %v476_v18 = vld [vmem:[%s2847_s10 + $0x168] sm:$0xff]  ;;  %v547_v20 = vpack.c.bf16 %v475_v16, %v469_v14  ;;  %v457_v22 = vld [vmem:[%s2847_s10 + $0xd0] sm:$0xff]  ;;  %v463_v24 = vld [vmem:[%s2847_s10 + $0x100] sm:$0xff] }
  0x46   : > { %640 = vmatpush.bf16.msra.mxu1 %v546_v29  ;;  %2498 = vmatpush.bf16.msra.mxu3 %v546_v29  ;;  %v2931_v19 = vld [vmem:[%s3475_s3 + $0x8] sm:$0xff]  ;;  %v548_v21 = vpack.c.bf16 %v476_v18, %v470_v17  ;;  %v2934_v23 = vpack.c.b16 %v592_v15, %v592_v15  ;;  %v458_v25 = vld [vmem:[%s2847_s10 + $0xd8] sm:$0xff]  ;;  %v541_v27 = vpack.c.bf16 %v463_v24, %v457_v22  ;;  %v445_v29 = vld [vmem:[%s2847_s10 + $0x70] sm:$0xff] }
  0x47   : > { %v464_v26 = vld [vmem:[%s2847_s10 + $0x108] sm:$0xff]  ;;  %v526_v31 = vld [vmem:[%s2847_s10 + $0x2f8] sm:$0xff]  ;;  %v451_v32 = vld [vmem:[%s2847_s10 + $0xa0] sm:$0xff] }
  0x48   : > { %v542_v28 = vpack.c.bf16 %v464_v26, %v458_v25  ;;  %v520_v30 = vld [vmem:[%s2847_s10 + $0x2c8] sm:$0xff]  ;;  %v446_v33 = vld [vmem:[%s2847_s10 + $0x78] sm:$0xff]  ;;  %v507_v36 = vld [vmem:[%s2847_s10 + $0x260] sm:$0xff]  ;;  %v535_v43 = vpack.c.bf16 %v451_v32, %v445_v29 }
  0x49   : > { %608 = vmatpush.bf16.msra.mxu0 %v539_v34  ;;  %2491 = vmatpush.bf16.msra.mxu2 %v539_v34  ;;  %v452_v34 = vld [vmem:[%s2847_s10 + $0xa8] sm:$0xff]  ;;  %v513_v37 = vld [vmem:[%s2847_s10 + $0x290] sm:$0xff]  ;;  %v502_v48 = vld [vmem:[%s2847_s10 + $0x238] sm:$0xff] }
  0x4a   : > { %641 = vmatpush.bf16.msra.mxu1 %v540_v35  ;;  %2499 = vmatpush.bf16.msra.mxu3 %v540_v35  ;;  %v574_v35 = vpack.c.bf16 %v526_v31, %v520_v30  ;;  %v508_v38 = vld [vmem:[%s2847_s10 + $0x268] sm:$0xff]  ;;  %v567_v39 = vpack.c.bf16 %v513_v37, %v507_v36  ;;  %v501_v42 = vld [vmem:[%s2847_s10 + $0x230] sm:$0xff]  ;;  %v536_v44 = vpack.c.bf16 %v452_v34, %v446_v33  ;;  %v439_v49 = vld [vmem:[%s2847_s10 + $0x40] sm:$0xff] }
  0x4b   : > { %v433_v45 = vld [vmem:[%s2847_s10 + $0x10] sm:$0xff]  ;;  %v496_v47 = vld [vmem:[%s2847_s10 + $0x208] sm:$0xff]  ;;  %v471_v1 = vld [vmem:[%s2847_s10 + $0x140] sm:$0xff] }
  0x4c   : > { %v489_v56 = vld [vmem:[%s2847_s10 + $0x1d0] sm:$0xff]  ;;  %v562_v57 = vpack.c.bf16 %v502_v48, %v496_v47  ;;  %v529_v58 = vpack.c.bf16 %v439_v49, %v433_v45  ;;  %v472_v3 = vld [vmem:[%s2847_s10 + $0x148] sm:$0xff]  ;;  %v459_v7 = vld [vmem:[%s2847_s10 + $0xe0] sm:$0xff] }
  0x4d   : > { %609 = vmatpush.bf16.msra.mxu0 %v533_v40  ;;  %2492 = vmatpush.bf16.msra.mxu2 %v533_v40  ;;  %v514_v40 = vld [vmem:[%s2847_s10 + $0x298] sm:$0xff]  ;;  %v2968_v0 = vld [vmem:[%s3475_s3 + $0x10] sm:$0xff]  ;;  %v460_v9 = vld [vmem:[%s2847_s10 + $0xe8] sm:$0xff] }
  0x4e   : > { %642 = vmatpush.bf16.msra.mxu1 %v534_v41  ;;  %2500 = vmatpush.bf16.msra.mxu3 %v534_v41  ;;  %v495_v41 = vld [vmem:[%s2847_s10 + $0x200] sm:$0xff]  ;;  %v568_v46 = vpack.c.bf16 %v514_v40, %v508_v38  ;;  %v477_v2 = vld [vmem:[%s2847_s10 + $0x170] sm:$0xff]  ;;  %v466_v11 = vld [vmem:[%s2847_s10 + $0x118] sm:$0xff] }
  0x4f   : > { %v465_v8 = vld [vmem:[%s2847_s10 + $0x110] sm:$0xff]  ;;  %v448_v15 = vld [vmem:[%s2847_s10 + $0x88] sm:$0xff]  ;;  %v454_v16 = vld [vmem:[%s2847_s10 + $0xb8] sm:$0xff] }
  0x50   : > { %v543_v10 = vpack.c.bf16 %v465_v8, %v459_v7  ;;  %v453_v14 = vld [vmem:[%s2847_s10 + $0xb0] sm:$0xff]  ;;  %v538_v18 = vpack.c.bf16 %v454_v16, %v448_v15  ;;  %v436_v22 = vld [vmem:[%s2847_s10 + $0x28] sm:$0xff]  ;;  %v442_v24 = vld [vmem:[%s2847_s10 + $0x58] sm:$0xff] }
  0x51   : > { %610 = vmatpush.bf16.msra.mxu0 %v527_v50  ;;  %2493 = vmatpush.bf16.msra.mxu2 %v527_v50  ;;  %v434_v50 = vld [vmem:[%s2847_s10 + $0x18] sm:$0xff]  ;;  %v532_v26 = vpack.c.bf16 %v442_v24, %v436_v22  ;;  %v2114_v29 = vld [vmem:[#allocation5 + $0xf0] sm:$0xf]  ;;  %v2042_v32 = vld [vmem:[#allocation5 + $0x60] sm:$0xf] }
  0x52   : > { %643 = vmatpush.bf16.msra.mxu1 %v528_v51  ;;  %2501 = vmatpush.bf16.msra.mxu3 %v528_v51  ;;  %v440_v51 = vld [vmem:[%s2847_s10 + $0x48] sm:$0xff]  ;;  %v2420_v31 = vld [vmem:[#allocation5 + $0xf4] sm:$0xf0]  ;;  %v2170_v47 = vld [vmem:[#allocation5 + $0x160] sm:$0xf] }
  0x53   : > { %v530_v59 = vpack.c.bf16 %v440_v51, %v434_v50  ;;  %v2402_v33 = vld [vmem:[#allocation5 + $0x64] sm:$0xf0]  ;;  %v2115_v34 = vor.u32 %v2420_v31, %v2114_v29  ;;  %v2436_v36 = vld [vmem:[#allocation5 + $0x174] sm:$0xf0]  ;;  %v2098_v49 = vld [vmem:[#allocation5 + $0xd0] sm:$0xf] }
  0x54   : > { %611 = vmatmul.bf16.vlgmr.msra.gmra.mxu0 %v2896_v52  ;;  %626 = vmatmul.bf16.vlgmr.msra.gmra.mxu2 %v2901_v53  ;;  %v2043_v37 = vor.u32 %v2402_v33, %v2042_v32  ;;  %v2418_v40 = vld [vmem:[#allocation5 + $0xe4] sm:$0xf0]  ;;  %v2416_v51 = vld [vmem:[#allocation5 + $0xd4] sm:$0xf0]  ;;  %v2082_v7 = vld [vmem:[#allocation5 + $0xb0] sm:$0xf] }
  0x55   : > { %669 = vmatpush.bf16.msrb.mxu2 %v571_v54  ;;  %644 = vmatmul.bf16.vlgmr.msra.gmra.mxu1 %v2896_v52  ;;  %v561_v54 = vpack.c.bf16 %v501_v42, %v495_v41  ;;  %v2242_v41 = vld [vmem:[#allocation5 + $0x1f0] sm:$0xf]  ;;  %v2452_v42 = vld [vmem:[#allocation5 + $0x1f4] sm:$0xf0]  ;;  %v2434_v48 = vld [vmem:[#allocation5 + $0x164] sm:$0xf0] }
  0x56   : > { %702 = vmatpush.bf16.msrb.mxu3 %v572_v55  ;;  %735 = vmatpush.bf16.msrb.mxu0 %v573_v4  ;;  %v483_v55 = vld [vmem:[%s2847_s10 + $0x1a0] sm:$0xff]  ;;  %v549_v4 = vpack.c.bf16 %v477_v2, %v471_v1  ;;  %v2243_v45 = vor.u32 %v2452_v42, %v2242_v41  ;;  %v2171_v50 = vor.u32 %v2434_v48, %v2170_v47  ;;  %v2226_v2 = vld [vmem:[#allocation5 + $0x1d0] sm:$0xf]  ;;  %v2394_v16 = vld [vmem:[#allocation5 + $0x24] sm:$0xf0] }
  0x57   : > { %659 = vmatmul.bf16.vlgmr.msra.gmra.mxu3 %v2901_v53  ;;  %768 = vmatpush.bf16.msrb.mxu1 %v574_v35  ;;  %v555_v62 = vpack.c.bf16 %v489_v56, %v483_v55  ;;  %v2178_v35 = vld [vmem:[#allocation5 + $0x170] sm:$0xf]  ;;  %v2450_v55 = vld [vmem:[#allocation5 + $0x1e4] sm:$0xf0]  ;;  %v2099_v56 = vor.u32 %v2416_v51, %v2098_v49  ;;  %v2010_v15 = vld [vmem:[#allocation5 + $0x20] sm:$0xf] }
  0x58   : > { %v2179_v38 = vor.u32 %v2436_v36, %v2178_v35  ;;  %v2218_v22 = vld [vmem:[#allocation5 + $0x1c0] sm:$0xf]  ;;  %v2446_v24 = vld [vmem:[#allocation5 + $0x1c4] sm:$0xf0]  ;;  %v2408_v29 = vld [vmem:[#allocation5 + $0x94] sm:$0xf0] }
  0x59   : > { %670 = vmatpush.bf16.msrb.mxu2 %v565_v60  ;;  %v484_v60 = vld [vmem:[%s2847_s10 + $0x1a8] sm:$0xff]  ;;  %v2058_v33 = vld [vmem:[#allocation5 + $0x80] sm:$0xf]  ;;  %v2444_v41 = vld [vmem:[#allocation5 + $0x1b4] sm:$0xf0] }
  0x5a   : > { %703 = vmatpush.bf16.msrb.mxu3 %v566_v61  ;;  %736 = vmatpush.bf16.msrb.mxu0 %v567_v39  ;;  %v490_v61 = vld [vmem:[%s2847_s10 + $0x1d8] sm:$0xff]  ;;  %v2106_v39 = vld [vmem:[#allocation5 + $0xe0] sm:$0xf]  ;;  %v2390_v32 = vld [vmem:[#allocation5 + $0x4] sm:$0xf0] }
  0x5b   : > { %769 = vmatpush.bf16.msrb.mxu1 %v568_v46  ;;  %v556_v63 = vpack.c.bf16 %v490_v61, %v484_v60  ;;  %v2162_v60 = vld [vmem:[#allocation5 + $0x150] sm:$0xf]  ;;  %v2406_v35 = vld [vmem:[#allocation5 + $0x84] sm:$0xf0]  ;;  %v2138_v42 = vld [vmem:[#allocation5 + $0x120] sm:$0xf] }
  0x5c   : > { %v2059_v36 = vor.u32 %v2406_v35, %v2058_v33  ;;  %v2130_v47 = vld [vmem:[#allocation5 + $0x110] sm:$0xf]  ;;  %v2424_v48 = vld [vmem:[#allocation5 + $0x114] sm:$0xf0]  ;;  %v2401_v35 = vld [vmem:[#allocation5 + $0x64] sm:$0xf] }
  0x5d   : > { %671 = vmatpush.bf16.msrb.mxu2 %v559_v5  ;;  %v478_v5 = vld [vmem:[%s2847_s10 + $0x178] sm:$0xff]  ;;  %v2131_v49 = vor.u32 %v2424_v48, %v2130_v47  ;;  %v2290_v33 = vld [vmem:[#allocation5 + $0x250] sm:$0xf]  ;;  %v2282_v47 = vld [vmem:[#allocation5 + $0x240] sm:$0xf] }
  0x5e   : > { %704 = vmatpush.bf16.msrb.mxu3 %v560_v6  ;;  %737 = vmatpush.bf16.msrb.mxu0 %v561_v54  ;;  %v550_v6 = vpack.c.bf16 %v478_v5, %v472_v3  ;;  %v2234_v54 = vld [vmem:[#allocation5 + $0x1e0] sm:$0xf]  ;;  %v2448_v3 = vld [vmem:[#allocation5 + $0x1d4] sm:$0xf0]  ;;  %v2462_v48 = vld [vmem:[#allocation5 + $0x244] sm:$0xf0] }
  0x5f   : > { %770 = vmatpush.bf16.msrb.mxu1 %v562_v57  ;;  %v2235_v57 = vor.u32 %v2450_v55, %v2234_v54  ;;  %v2227_v8 = vor.u32 %v2448_v3, %v2226_v2  ;;  %v2440_v51 = vld [vmem:[#allocation5 + $0x194] sm:$0xf0]  ;;  %v2186_v3 = vld [vmem:[#allocation5 + $0x180] sm:$0xf] }
  0x61   : > { %672 = vmatpush.bf16.msrb.mxu2 %v553_v12  ;;  %v544_v12 = vpack.c.bf16 %v466_v11, %v460_v9  ;;  %v2154_v11 = vld [vmem:[#allocation5 + $0x140] sm:$0xf] }
  0x62   : > { %705 = vmatpush.bf16.msrb.mxu3 %v554_v13  ;;  %738 = vmatpush.bf16.msrb.mxu0 %v555_v62  ;;  %v447_v13 = vld [vmem:[%s2847_s10 + $0x80] sm:$0xff] }
  0x63   : > { %771 = vmatpush.bf16.msrb.mxu1 %v556_v63  ;;  %v537_v17 = vpack.c.bf16 %v453_v14, %v447_v13  ;;  %v2090_v62 = vld [vmem:[#allocation5 + $0xc0] sm:$0xf]  ;;  %v2414_v63 = vld [vmem:[#allocation5 + $0xc4] sm:$0xf0] }
  0x64   : > { %616 = vmatmul.bf16.gmra.mxu0 %v2931_v19  ;;  %631 = vmatmul.bf16.gmra.mxu2 %v2934_v23  ;;  %v2091_v5 = vor.u32 %v2414_v63, %v2090_v62 }
  0x65   : > { %673 = vmatpush.bf16.msrb.mxu2 %v547_v20  ;;  %649 = vmatmul.bf16.gmra.mxu1 %v2931_v19  ;;  %v435_v20 = vld [vmem:[%s2847_s10 + $0x20] sm:$0xff] }
  0x66   : > { %706 = vmatpush.bf16.msrb.mxu3 %v548_v21  ;;  %739 = vmatpush.bf16.msrb.mxu0 %v549_v4  ;;  %v441_v21 = vld [vmem:[%s2847_s10 + $0x50] sm:$0xff] }
  0x67   : > { %664 = vmatmul.bf16.gmra.mxu3 %v2934_v23  ;;  %772 = vmatpush.bf16.msrb.mxu1 %v550_v6  ;;  %v531_v25 = vpack.c.bf16 %v441_v21, %v435_v20  ;;  %v2018_v4 = vld [vmem:[#allocation5 + $0x30] sm:$0xf]  ;;  %v2396_v6 = vld [vmem:[#allocation5 + $0x34] sm:$0xf0]  ;;  %v2410_v20 = vld [vmem:[#allocation5 + $0xa4] sm:$0xf0] }
  0x68   : > { %v2019_v9 = vor.u32 %v2396_v6, %v2018_v4  ;;  %v2438_v4 = vld [vmem:[#allocation5 + $0x184] sm:$0xf0] }
  0x69   : > { %674 = vmatpush.bf16.msrb.mxu2 %v541_v27  ;;  %v2050_v27 = vld [vmem:[#allocation5 + $0x70] sm:$0xf] }
  0x6a   : > { %707 = vmatpush.bf16.msrb.mxu3 %v542_v28  ;;  %740 = vmatpush.bf16.msrb.mxu0 %v543_v10  ;;  %v2404_v28 = vld [vmem:[#allocation5 + $0x74] sm:$0xf0] }
  0x6b   : > { %773 = vmatpush.bf16.msrb.mxu1 %v544_v12  ;;  %v2051_v30 = vor.u32 %v2404_v28, %v2050_v27  ;;  %v2412_v10 = vld [vmem:[#allocation5 + $0xb4] sm:$0xf0]  ;;  %v2430_v12 = vld [vmem:[#allocation5 + $0x144] sm:$0xf0]  ;;  %v2066_v28 = vld [vmem:[#allocation5 + $0x90] sm:$0xf] }
  0x6c   : > { %v2155_v13 = vor.u32 %v2430_v12, %v2154_v11  ;;  %v2083_v14 = vor.u32 %v2412_v10, %v2082_v7  ;;  %v2392_v27 = vld [vmem:[#allocation5 + $0x14] sm:$0xf0]  ;;  %v2067_v31 = vor.u32 %v2408_v29, %v2066_v28  ;;  %v2187_v7 = vor.u32 %v2438_v4, %v2186_v3 }
  0x6d   : > { %675 = vmatpush.bf16.msrb.mxu2 %v535_v43  ;;  %v2034_v43 = vld [vmem:[#allocation5 + $0x50] sm:$0xf] }
  0x6e   : > { %708 = vmatpush.bf16.msrb.mxu3 %v536_v44  ;;  %741 = vmatpush.bf16.msrb.mxu0 %v537_v17  ;;  %v2400_v44 = vld [vmem:[#allocation5 + $0x54] sm:$0xf0]  ;;  %v2074_v17 = vld [vmem:[#allocation5 + $0xa0] sm:$0xf] }
  0x6f   : > { %774 = vmatpush.bf16.msrb.mxu1 %v538_v18  ;;  %v2035_v46 = vor.u32 %v2400_v44, %v2034_v43  ;;  %v2011_v18 = vor.u32 %v2394_v16, %v2010_v15  ;;  %v2075_v21 = vor.u32 %v2410_v20, %v2074_v17  ;;  %v2202_v43 = vld [vmem:[#allocation5 + $0x1a0] sm:$0xf]  ;;  %v2466_v15 = vld [vmem:[#allocation5 + $0x264] sm:$0xf0]  ;;  %v2403_v16 = vld [vmem:[#allocation5 + $0x74] sm:$0xf] }
  0x70   : > { %v2362_v20 = vld [vmem:[#allocation5 + $0x2e0] sm:$0xf] }
  0x71   : > { %676 = vmatpush.bf16.msrb.mxu2 %v529_v58  ;;  %v2026_v58 = vld [vmem:[#allocation5 + $0x40] sm:$0xf] }
  0x72   : > { %709 = vmatpush.bf16.msrb.mxu3 %v530_v59  ;;  %742 = vmatpush.bf16.msrb.mxu0 %v531_v25  ;;  %v2398_v59 = vld [vmem:[#allocation5 + $0x44] sm:$0xf0]  ;;  %v2002_v25 = vld [vmem:[#allocation5 + $0x10] sm:$0xf] }
  0x73   : > { %775 = vmatpush.bf16.msrb.mxu1 %v532_v26  ;;  %v2027_v61 = vor.u32 %v2398_v59, %v2026_v58  ;;  %v2219_v26 = vor.u32 %v2446_v24, %v2218_v22  ;;  %v2122_v59 = vld [vmem:[#allocation5 + $0x100] sm:$0xf] }
  0x74   : > { %621 = vmatmul.bf16.gmra.mxu0 %v2968_v0  ;;  %677 = vmatmul.bf16.vlgmr.msrb.gmra.mxu2 %v2896_v52 }
  0x75   : > { %654 = vmatmul.bf16.gmra.mxu1 %v2968_v0  ;;  %1316 = vmatpush.bf16.msra.mxu2 %v2051_v30  ;;  %v2003_v30 = vor.u32 %v2392_v27, %v2002_v25  ;;  %v2419_v25 = vld [vmem:[#allocation5 + $0xf4] sm:$0xf] }
  0x76   : > { %1349 = vmatpush.bf16.msra.mxu3 %v2115_v34  ;;  %1382 = vmatpush.bf16.msra.mxu0 %v2179_v38  ;;  %v2428_v38 = vld [vmem:[#allocation5 + $0x134] sm:$0xf0] }
  0x77   : > { %710 = vmatmul.bf16.vlgmr.msrb.gmra.mxu3 %v2896_v52  ;;  %1415 = vmatpush.bf16.msra.mxu1 %v2243_v45  ;;  %v2442_v45 = vld [vmem:[#allocation5 + $0x1a4] sm:$0xf0] }
  0x79   : > { %1317 = vmatpush.bf16.msra.mxu2 %v2043_v37  ;;  %v2146_v37 = vld [vmem:[#allocation5 + $0x130] sm:$0xf] }
  0x7a   : > { %1383 = vmatpush.bf16.msra.mxu0 %v2171_v50  ;;  %v2194_v50 = vld [vmem:[#allocation5 + $0x190] sm:$0xf] }
  0x7b   : > { %1416 = vmatpush.bf16.msra.mxu1 %v2235_v57  ;;  %v2195_v55 = vor.u32 %v2440_v51, %v2194_v50  ;;  %v2283_v50 = vor.u32 %v2462_v48, %v2282_v47  ;;  %v2036_v51 = vld [vmem:[#allocation5 + $0x58] sm:$0xf0]  ;;  %v2470_v47 = vld [vmem:[#allocation5 + $0x284] sm:$0xf0]  ;;  %v2395_v48 = vld [vmem:[#allocation5 + $0x34] sm:$0xf] }
  0x7d   : > { %1318 = vmatpush.bf16.msra.mxu2 %v2035_v46  ;;  %v2203_v46 = vor.u32 %v2442_v45, %v2202_v43 }
  0x7f   : > { %1417 = vmatpush.bf16.msra.mxu1 %v2227_v8  ;;  %v2484_v8 = vld [vmem:[#allocation5 + $0x2f4] sm:$0xf0] }
  0x81   : > { %1319 = vmatpush.bf16.msra.mxu2 %v2027_v61  ;;  %v2306_v61 = vld [vmem:[#allocation5 + $0x270] sm:$0xf] }
  0x83   : > { %1418 = vmatpush.bf16.msra.mxu1 %v2219_v26  ;;  %v2116_v26 = vld [vmem:[#allocation5 + $0xf8] sm:$0xf0] }
  0x84   : > { %682 = vmatmul.bf16.gmra.mxu2 %v2931_v19  ;;  %743 = vmatmul.bf16.vlgmr.msrb.gmra.mxu0 %v2896_v52  ;;  %v2119_v27 = vor.u32 %v2419_v25, %v2116_v26  ;;  %v2474_v25 = vld [vmem:[#allocation5 + $0x2a4] sm:$0xf0] }
  0x85   : > { %776 = vmatmul.bf16.vlgmr.msrb.gmra.mxu1 %v2896_v52  ;;  %v2107_v52 = vor.u32 %v2418_v40, %v2106_v39  ;;  %1320 = vmatpush.bf16.msra.mxu2 %v2019_v9  ;;  %v2147_v39 = vor.u32 %v2428_v38, %v2146_v37  ;;  %v2210_v40 = vld [vmem:[#allocation5 + $0x1b0] sm:$0xf]  ;;  %v2044_v37 = vld [vmem:[#allocation5 + $0x68] sm:$0xf0] }
  0x86   : > { %v2354_v38 = vld [vmem:[#allocation5 + $0x2d0] sm:$0xf] }
  0x87   : > { %715 = vmatmul.bf16.gmra.mxu3 %v2931_v19 }
  0x88   : > { %1350 = vmatpush.bf16.msra.mxu3 %v2107_v52  ;;  %v2211_v52 = vor.u32 %v2444_v41, %v2210_v40  ;;  %v2047_v41 = vor.u32 %v2401_v35, %v2044_v37  ;;  %v2092_v35 = vld [vmem:[#allocation5 + $0xc8] sm:$0xf0] }
  0x89   : > { %1321 = vmatpush.bf16.msra.mxu2 %v2011_v18  ;;  %v2052_v18 = vld [vmem:[#allocation5 + $0x78] sm:$0xf0] }
  0x8a   : > { %1419 = vmatpush.bf16.msra.mxu1 %v2211_v52  ;;  %v2055_v22 = vor.u32 %v2403_v16, %v2052_v18  ;;  %v2458_v16 = vld [vmem:[#allocation5 + $0x224] sm:$0xf0] }
  0x8c   : > { %1351 = vmatpush.bf16.msra.mxu3 %v2099_v56 }
  0x8d   : > { %1322 = vmatpush.bf16.msra.mxu2 %v2003_v30 }
  0x8e   : > { %1420 = vmatpush.bf16.msra.mxu1 %v2203_v46 }
  0x90   : > { %1352 = vmatpush.bf16.msra.mxu3 %v2091_v5  ;;  %v2370_v5 = vld [vmem:[#allocation5 + $0x2f0] sm:$0xf] }
  0x91   : > { %v2371_v9 = vor.u32 %v2484_v8, %v2370_v5  ;;  %v2274_v5 = vld [vmem:[#allocation5 + $0x230] sm:$0xf] }
  0x92   : > { %1421 = vmatpush.bf16.msra.mxu1 %v2195_v55  ;;  %v2338_v8 = vld [vmem:[#allocation5 + $0x2b0] sm:$0xf] }
  0x94   : > { %687 = vmatmul.bf16.gmra.mxu2 %v2968_v0  ;;  %748 = vmatmul.bf16.gmra.mxu0 %v2931_v19 }
  0x95   : > { %781 = vmatmul.bf16.gmra.mxu1 %v2931_v19  ;;  %v2432_v19 = vld [vmem:[#allocation5 + $0x154] sm:$0xf0]  ;;  %1353 = vmatpush.bf16.msra.mxu3 %v2083_v14  ;;  %v2298_v14 = vld [vmem:[#allocation5 + $0x260] sm:$0xf] }
  0x96   : > { %v2163_v1 = vor.u32 %v2432_v19, %v2162_v60  ;;  %v2422_v60 = vld [vmem:[#allocation5 + $0x104] sm:$0xf0]  ;;  %1422 = vmatpush.bf16.msra.mxu1 %v2187_v7  ;;  %v2299_v17 = vor.u32 %v2466_v15, %v2298_v14  ;;  %v2460_v7 = vld [vmem:[#allocation5 + $0x234] sm:$0xf0]  ;;  %v2266_v15 = vld [vmem:[#allocation5 + $0x220] sm:$0xf] }
  0x97   : > { %720 = vmatmul.bf16.gmra.mxu3 %v2968_v0  ;;  %v2123_v62 = vor.u32 %v2422_v60, %v2122_v59  ;;  %v2478_v59 = vld [vmem:[#allocation5 + $0x2c4] sm:$0xf0] }
  0x98   : > { %1384 = vmatpush.bf16.msra.mxu0 %v2163_v1 }
  0x99   : > { %1354 = vmatpush.bf16.msra.mxu3 %v2075_v21  ;;  %v2482_v21 = vld [vmem:[#allocation5 + $0x2e4] sm:$0xf0] }
  0x9a   : > { %v2363_v24 = vor.u32 %v2482_v21, %v2362_v20  ;;  %1547 = vmatpush.bf16.msrb.mxu1 %v2119_v27  ;;  %v2397_v21 = vld [vmem:[#allocation5 + $0x44] sm:$0xf] }
  0x9c   : > { %1385 = vmatpush.bf16.msra.mxu0 %v2155_v13 }
  0x9d   : > { %1355 = vmatpush.bf16.msra.mxu3 %v2067_v31 }
  0xa0   : > { %1386 = vmatpush.bf16.msra.mxu0 %v2147_v39  ;;  %v2480_v39 = vld [vmem:[#allocation5 + $0x2d4] sm:$0xf0] }
  0xa1   : > { %1356 = vmatpush.bf16.msra.mxu3 %v2059_v36  ;;  %v2355_v52 = vor.u32 %v2480_v39, %v2354_v38  ;;  %v2456_v38 = vld [vmem:[#allocation5 + $0x214] sm:$0xf0]  ;;  %v2322_v39 = vld [vmem:[#allocation5 + $0x290] sm:$0xf] }
  0xa4   : > { %692 = vmatmul.bf16.gmra.mxu2 %v2901_v53  ;;  %753 = vmatmul.bf16.gmra.mxu0 %v2968_v0 }
  0xa5   : > { %786 = vmatmul.bf16.gmra.mxu1 %v2968_v0  ;;  %v1994_v0 = vld [vmem:[#allocation5] sm:$0xf]  ;;  %1481 = vmatpush.bf16.msrb.mxu3 %v2371_v9  ;;  %v2275_v9 = vor.u32 %v2460_v7, %v2274_v5  ;;  %v2409_v5 = vld [vmem:[#allocation5 + $0xa4] sm:$0xf] }
  0xa6   : > { %v1995_v34 = vor.u32 %v2390_v32, %v1994_v0 }
  0xa7   : > { %725 = vmatmul.bf16.gmra.mxu3 %v2901_v53 }
  0xa8   : > { %1323 = vmatpush.bf16.msra.mxu2 %v1995_v34  ;;  %v2464_v34 = vld [vmem:[#allocation5 + $0x254] sm:$0xf0] }
  0xa9   : > { %1482 = vmatpush.bf16.msrb.mxu3 %v2363_v24  ;;  %v2291_v36 = vor.u32 %v2464_v34, %v2290_v33  ;;  %v2267_v24 = vor.u32 %v2458_v16, %v2266_v15  ;;  %v2413_v34 = vld [vmem:[#allocation5 + $0xc4] sm:$0xf] }
  0xaa   : > { %v2095_v37 = vor.u32 %v2413_v34, %v2092_v35 }
  0xad   : > { %1483 = vmatpush.bf16.msrb.mxu3 %v2355_v52 }
  0xb4   : > { %697 = vmatmul.bf16.gmra.mxu2 %v2934_v23  ;;  %758 = vmatmul.bf16.gmra.mxu0 %v2901_v53 }
  0xb5   : > { %791 = vmatmul.bf16.gmra.mxu1 %v2901_v53  ;;  %v2426_v53 = vld [vmem:[#allocation5 + $0x124] sm:$0xf0] }
  0xb6   : > { %v2139_v44 = vor.u32 %v2426_v53, %v2138_v42  ;;  %v2417_v42 = vld [vmem:[#allocation5 + $0xe4] sm:$0xf]  ;;  %v2108_v53 = vld [vmem:[#allocation5 + $0xe8] sm:$0xf0] }
  0xb7   : > { %730 = vmatmul.bf16.gmra.mxu3 %v2934_v23 }
  0xb8   : > { %1387 = vmatpush.bf16.msra.mxu0 %v2139_v44  ;;  %v2111_v44 = vor.u32 %v2417_v42, %v2108_v53  ;;  %v2250_v53 = vld [vmem:[#allocation5 + $0x200] sm:$0xf] }
  0xba   : > { %1548 = vmatpush.bf16.msrb.mxu1 %v2111_v44  ;;  %v2314_v44 = vld [vmem:[#allocation5 + $0x280] sm:$0xf] }
  0xbc   : > { %1388 = vmatpush.bf16.msra.mxu0 %v2131_v49  ;;  %v2399_v49 = vld [vmem:[#allocation5 + $0x54] sm:$0xf] }
  0xc0   : > { %1389 = vmatpush.bf16.msra.mxu0 %v2123_v62  ;;  %v2100_v62 = vld [vmem:[#allocation5 + $0xd8] sm:$0xf0] }
  0xc4   : > { %763 = vmatmul.bf16.gmra.mxu0 %v2934_v23 }
  0xc5   : > { %796 = vmatmul.bf16.gmra.mxu1 %v2934_v23  ;;  %v2468_v23 = vld [vmem:[#allocation5 + $0x274] sm:$0xf0]  ;;  %1514 = vmatpush.bf16.msrb.mxu0 %v2055_v22  ;;  %v2028_v22 = vld [vmem:[#allocation5 + $0x48] sm:$0xf0] }
  0xc6   : > { %v2307_v2 = vor.u32 %v2468_v23, %v2306_v61  ;;  %v2031_v27 = vor.u32 %v2397_v21, %v2028_v22  ;;  %v2004_v21 = vld [vmem:[#allocation5 + $0x18] sm:$0xf0] }
  0xc8   : > { %1448 = vmatpush.bf16.msrb.mxu2 %v2307_v2 }
  0xc9   : > { %1515 = vmatpush.bf16.msrb.mxu0 %v2047_v41 }
  0xcc   : > { %1449 = vmatpush.bf16.msrb.mxu2 %v2299_v17  ;;  %v2330_v17 = vld [vmem:[#allocation5 + $0x2a0] sm:$0xf] }
  0xd0   : > { %1450 = vmatpush.bf16.msrb.mxu2 %v2291_v36  ;;  %v2258_v36 = vld [vmem:[#allocation5 + $0x210] sm:$0xf] }
  0xd1   : > { %v612_v54 = vpop.f32.mrf.mxu0  ;;  %v2259_v41 = vor.u32 %v2456_v38, %v2258_v36  ;;  %v2389_v36 = vld [vmem:[#allocation5 + $0x4] sm:$0xf]  ;;  %v2435_v38 = vld [vmem:[#allocation5 + $0x174] sm:$0xf] }
  0xd2   : > { %v645_v56 = vpop.f32.mrf.mxu1 }
  0xd4   : > { %1451 = vmatpush.bf16.msrb.mxu2 %v2283_v50  ;;  %v2315_v50 = vor.u32 %v2470_v47, %v2314_v44  ;;  %v2451_v44 = vld [vmem:[#allocation5 + $0x1f4] sm:$0xf] }
  0xd7   : > { %v3008_v57 = vpop.f32.mrf.mxu2 }
  0xd8   : > { %1452 = vmatpush.bf16.msrb.mxu2 %v2275_v9 }
  0xd9   : > { %v614_v19 = vpop.f32.mrf.mxu0 }
  0xda   : > { %v3010_v58 = vpop.f32.mrf.mxu3  ;;  %v3012_v63 = vpack.c.bf16 %v614_v19, %v612_v54  ;;  %v647_v1 = vpop.f32.mrf.mxu1  ;;  %v2039_v54 = vor.u32 %v2399_v49, %v2036_v51  ;;  %v2415_v19 = vld [vmem:[#allocation5 + $0xd4] sm:$0xf]  ;;  %v2020_v49 = vld [vmem:[#allocation5 + $0x38] sm:$0xf0] }
  0xdb   : > { %v3014_v6 = vpack.c.bf16 %v647_v1, %v645_v56  ;;  %v2346_v56 = vld [vmem:[#allocation5 + $0x2c0] sm:$0xf]  ;;  %v2103_v1 = vor.u32 %v2415_v19, %v2100_v62  ;;  %v2023_v51 = vor.u32 %v2395_v48, %v2020_v49 }
  0xdc   : > { %1324 = vmatmul.bf16.vlgmr.msra.gmra.mxu2 %v3012_v63  ;;  %1516 = vmatpush.bf16.msrb.mxu0 %v2039_v54  ;;  %v2347_v61 = vor.u32 %v2478_v59, %v2346_v56 }
  0xdd   : > { %1357 = vmatmul.bf16.vlgmr.msra.gmra.mxu3 %v3014_v6  ;;  %1549 = vmatpush.bf16.msrb.mxu1 %v2103_v1  ;;  %v2393_v1 = vld [vmem:[#allocation5 + $0x24] sm:$0xf] }
  0xde   : > { %1484 = vmatpush.bf16.msrb.mxu3 %v2347_v61  ;;  %1453 = vmatpush.bf16.msrb.mxu2 %v2267_v24  ;;  %v2084_v61 = vld [vmem:[#allocation5 + $0xb8] sm:$0xf0] }
  0xdf   : > { %v3018_v10 = vpop.f32.mrf.mxu2 }
  0xe0   : > { %1517 = vmatpush.bf16.msrb.mxu0 %v2031_v27  ;;  %v3050_v54 = vpack.c.bf16 %v3018_v10, %v3008_v57  ;;  %v2068_v27 = vld [vmem:[#allocation5 + $0x98] sm:$0xf0] }
  0xe1   : > { %v617_v12 = vpop.f32.mrf.mxu0  ;;  %1550 = vmatpush.bf16.msrb.mxu1 %v2095_v37  ;;  %v1996_v37 = vld [vmem:[#allocation5 + $0x8] sm:$0xf0] }
  0xe2   : > { %v3020_v11 = vpop.f32.mrf.mxu3  ;;  %v650_v13 = vpop.f32.mrf.mxu1  ;;  %1454 = vmatpush.bf16.msrb.mxu2 %v2259_v41  ;;  %v2180_v41 = vld [vmem:[#allocation5 + $0x178] sm:$0xf0] }
  0xe3   : > { %v3056_v56 = vpack.c.bf16 %v3020_v11, %v3010_v58 }
  0xe4   : > { %1518 = vmatpush.bf16.msrb.mxu0 %v2023_v51 }
  0xe7   : > { %v3022_v28 = vpop.f32.mrf.mxu2 }
  0xe9   : > { %v619_v30 = vpop.f32.mrf.mxu0 }
  0xea   : > { %v3024_v29 = vpop.f32.mrf.mxu3  ;;  %v652_v31 = vpop.f32.mrf.mxu1  ;;  %v3026_v0 = vpack.c.bf16 %v619_v30, %v617_v12  ;;  %v2476_v12 = vld [vmem:[#allocation5 + $0x2b4] sm:$0xf0]  ;;  %v2331_v30 = vor.u32 %v2474_v25, %v2330_v17  ;;  %v2407_v25 = vld [vmem:[#allocation5 + $0x94] sm:$0xf] }
  0xeb   : > { %v3028_v32 = vpack.c.bf16 %v652_v31, %v650_v13  ;;  %v2339_v13 = vor.u32 %v2476_v12, %v2338_v8  ;;  %v2076_v8 = vld [vmem:[#allocation5 + $0xa8] sm:$0xf0]  ;;  %v3080_v16 = vpack.c.bf16 %v3024_v29, %v3024_v29  ;;  %v2071_v34 = vor.u32 %v2407_v25, %v2068_v27 }
  0xec   : > { %1329 = vmatmul.bf16.gmra.mxu2 %v3026_v0  ;;  %v2079_v9 = vor.u32 %v2409_v5, %v2076_v8  ;;  %v2449_v5 = vld [vmem:[#allocation5 + $0x1e4] sm:$0xf] }
  0xed   : > { %1362 = vmatmul.bf16.gmra.mxu3 %v3028_v32 }
  0xee   : > { %1485 = vmatpush.bf16.msrb.mxu3 %v2339_v13 }
  0xef   : > { %v634_v40 = vpop.f32.mrf.mxu2 }
  0xf0   : > { %v2472_v40 = vld [vmem:[#allocation5 + $0x294] sm:$0xf0] }
  0xf1   : > { %v622_v45 = vpop.f32.mrf.mxu0  ;;  %v2323_v52 = vor.u32 %v2472_v40, %v2322_v39  ;;  %v1999_v40 = vor.u32 %v2389_v36, %v1996_v37  ;;  %v2164_v36 = vld [vmem:[#allocation5 + $0x158] sm:$0xf0]  ;;  %v2465_v37 = vld [vmem:[#allocation5 + $0x264] sm:$0xf] }
  0xf2   : > { %v667_v43 = vpop.f32.mrf.mxu3  ;;  %v655_v46 = vpop.f32.mrf.mxu1  ;;  %1486 = vmatpush.bf16.msrb.mxu3 %v2331_v30 }
  0xf3   : > { %v2454_v43 = vld [vmem:[#allocation5 + $0x204] sm:$0xf0] }
  0xf6   : > { %1487 = vmatpush.bf16.msrb.mxu3 %v2323_v52  ;;  %v2405_v52 = vld [vmem:[#allocation5 + $0x84] sm:$0xf] }
  0xf7   : > { %v678_v55 = vpop.f32.mrf.mxu2 }
  0xf9   : > { %v624_v23 = vpop.f32.mrf.mxu0 }
  0xfa   : > { %v711_v60 = vpop.f32.mrf.mxu3  ;;  %v657_v2 = vpop.f32.mrf.mxu1  ;;  %v3032_v3 = vpack.c.bf16 %v624_v23, %v622_v45  ;;  %1488 = vmatpush.bf16.msrb.mxu3 %v2315_v50 }
  0xfb   : > { %v3034_v4 = vpack.c.bf16 %v657_v2, %v655_v46  ;;  %v2251_v46 = vor.u32 %v2454_v43, %v2250_v53  ;;  %v2012_v2 = vld [vmem:[#allocation5 + $0x28] sm:$0xf0]  ;;  %v2183_v53 = vor.u32 %v2435_v38, %v2180_v41  ;;  %v2228_v41 = vld [vmem:[#allocation5 + $0x1d8] sm:$0xf0] }
  0xfc   : > { %1334 = vmatmul.bf16.gmra.mxu2 %v3032_v3  ;;  %v2015_v7 = vor.u32 %v2393_v1, %v2012_v2  ;;  %v2308_v2 = vld [vmem:[#allocation5 + $0x278] sm:$0xf0] }
  0xfd   : > { %1367 = vmatmul.bf16.gmra.mxu3 %v3034_v4  ;;  %1455 = vmatpush.bf16.msrb.mxu2 %v2251_v46 }
  0xfe   : > { %1519 = vmatpush.bf16.msrb.mxu0 %v2015_v7  ;;  %v2236_v7 = vld [vmem:[#allocation5 + $0x1e8] sm:$0xf0] }
  0xff   : > { %v680_v14 = vpop.f32.mrf.mxu2 }
 0x100   : > { %v3038_v18 = vpack.c.bf16 %v680_v14, %v678_v55  ;;  %v3074_v14 = vpack.c.bf16 %v3022_v28, %v3022_v28 }
 0x101   : > { %v3043_v31 = vpop.f32.mrf.mxu0  ;;  %1580 = vmatpush.bf16.msra.mxu2 %v2183_v53  ;;  %v2481_v53 = vld [vmem:[#allocation5 + $0x2e4] sm:$0xf] }
 0x102   : > { %v713_v20 = vpop.f32.mrf.mxu3  ;;  %1390 = vmatmul.bf16.vlgmr.msra.gmra.mxu0 %v3038_v18  ;;  %v3046_v33 = vpop.f32.mrf.mxu1 }
 0x103   : > { %v3040_v26 = vpack.c.bf16 %v713_v20, %v711_v60  ;;  %v2411_v60 = vld [vmem:[#allocation5 + $0xb4] sm:$0xf] }
 0x104   : > { %v2087_v19 = vor.u32 %v2411_v60, %v2084_v61  ;;  %v2391_v20 = vld [vmem:[#allocation5 + $0x14] sm:$0xf] }
 0x105   : > { %1423 = vmatmul.bf16.vlgmr.msra.gmra.mxu1 %v3040_v26  ;;  %v2007_v22 = vor.u32 %v2391_v20, %v2004_v21 }
 0x106   : > { %1551 = vmatpush.bf16.msrb.mxu1 %v2087_v19 }
 0x107   : > { %v683_v42 = vpop.f32.mrf.mxu2  ;;  %1520 = vmatpush.bf16.msrb.mxu0 %v2007_v22 }
 0x109   : > { %v3052_v55 = vpop.f32.mrf.mxu0 }
 0x10a   : > { %v716_v45 = vpop.f32.mrf.mxu3  ;;  %v3058_v59 = vpop.f32.mrf.mxu1  ;;  %1552 = vmatpush.bf16.msrb.mxu1 %v2079_v9  ;;  %v3098_v49 = vpack.c.bf16 %v3052_v55, %v3043_v31  ;;  %v2172_v55 = vld [vmem:[#allocation5 + $0x168] sm:$0xf0]  ;;  %v2239_v9 = vor.u32 %v2449_v5, %v2236_v7 }
 0x10b   : > { %1521 = vmatpush.bf16.msrb.mxu0 %v1999_v40  ;;  %v3102_v50 = vpack.c.bf16 %v3058_v59, %v3046_v33  ;;  %v2433_v33 = vld [vmem:[#allocation5 + $0x164] sm:$0xf]  ;;  %v2467_v59 = vld [vmem:[#allocation5 + $0x274] sm:$0xf] }
 0x10c   : > { %1339 = vmatmul.bf16.gmra.mxu2 %v3050_v54  ;;  %v2175_v1 = vor.u32 %v2433_v33, %v2172_v55  ;;  %v2311_v8 = vor.u32 %v2467_v59, %v2308_v2  ;;  %v2447_v40 = vld [vmem:[#allocation5 + $0x1d4] sm:$0xf]  ;;  %v2292_v55 = vld [vmem:[#allocation5 + $0x258] sm:$0xf0]  ;;  %v2220_v2 = vld [vmem:[#allocation5 + $0x1c8] sm:$0xf0] }
 0x10d   : > { %1372 = vmatmul.bf16.gmra.mxu3 %v3056_v56 }
 0x10e   : > { %1553 = vmatpush.bf16.msrb.mxu1 %v2071_v34  ;;  %1581 = vmatpush.bf16.msra.mxu2 %v2175_v1  ;;  %v2431_v34 = vld [vmem:[#allocation5 + $0x154] sm:$0xf]  ;;  %v2445_v1 = vld [vmem:[#allocation5 + $0x1c4] sm:$0xf] }
 0x10f   : > { %v685_v57 = vpop.f32.mrf.mxu2  ;;  %1646 = vmatpush.bf16.msra.mxu0 %v2311_v8  ;;  %v2223_v7 = vor.u32 %v2445_v1, %v2220_v2  ;;  %v2124_v1 = vld [vmem:[#allocation5 + $0x108] sm:$0xf0]  ;;  %v2437_v2 = vld [vmem:[#allocation5 + $0x184] sm:$0xf] }
 0x110   : > { %v3062_v62 = vpack.c.bf16 %v685_v57, %v683_v42  ;;  %v2060_v42 = vld [vmem:[#allocation5 + $0x88] sm:$0xf0] }
 0x111   : > { %v3067_v58 = vpop.f32.mrf.mxu0  ;;  %v2063_v43 = vor.u32 %v2405_v52, %v2060_v42 }
 0x112   : > { %v718_v10 = vpop.f32.mrf.mxu3  ;;  %1395 = vmatmul.bf16.gmra.mxu0 %v3062_v62  ;;  %v3070_v11 = vpop.f32.mrf.mxu1 }
 0x113   : > { %v3064_v23 = vpack.c.bf16 %v718_v10, %v716_v45  ;;  %v2244_v45 = vld [vmem:[#allocation5 + $0x1f8] sm:$0xf0]  ;;  %1554 = vmatpush.bf16.msrb.mxu1 %v2063_v43  ;;  %v2364_v43 = vld [vmem:[#allocation5 + $0x2e8] sm:$0xf0] }
 0x114   : > { %v2247_v46 = vor.u32 %v2451_v44, %v2244_v45  ;;  %v2367_v45 = vor.u32 %v2481_v53, %v2364_v43  ;;  %v2477_v43 = vld [vmem:[#allocation5 + $0x2c4] sm:$0xf] }
 0x115   : > { %1428 = vmatmul.bf16.gmra.mxu1 %v3064_v23 }
 0x116   : > { %1613 = vmatpush.bf16.msra.mxu3 %v2247_v46 }
 0x117   : > { %v688_v12 = vpop.f32.mrf.mxu2 }
 0x119   : > { %v3076_v15 = vpop.f32.mrf.mxu0 }
 0x11a   : > { %v721_v13 = vpop.f32.mrf.mxu3  ;;  %v3082_v17 = vpop.f32.mrf.mxu1  ;;  %1614 = vmatpush.bf16.msra.mxu3 %v2239_v9  ;;  %v2479_v9 = vld [vmem:[#allocation5 + $0x2d4] sm:$0xf] }
 0x11b   : > { %v3126_v27 = vpack.c.bf16 %v3082_v17, %v3070_v11  ;;  %v2231_v17 = vor.u32 %v2447_v40, %v2228_v41  ;;  %v2204_v40 = vld [vmem:[#allocation5 + $0x1a8] sm:$0xf0] }
 0x11c   : > { %1344 = vmatmul.bf16.gmra.mxu2 %v3074_v14 }
 0x11d   : > { %1377 = vmatmul.bf16.gmra.mxu3 %v3080_v16 }
 0x11e   : > { %1615 = vmatpush.bf16.msra.mxu3 %v2231_v17 }
 0x11f   : > { %v690_v24 = vpop.f32.mrf.mxu2 }
 0x120   : > { %v3086_v30 = vpack.c.bf16 %v690_v24, %v688_v12  ;;  %v2483_v12 = vld [vmem:[#allocation5 + $0x2f4] sm:$0xf]  ;;  %v3120_v24 = vpack.c.bf16 %v3076_v15, %v3067_v58  ;;  %v2167_v58 = vor.u32 %v2431_v34, %v2164_v36  ;;  %v2300_v15 = vld [vmem:[#allocation5 + $0x268] sm:$0xf0] }
 0x121   : > { %v3091_v29 = vpop.f32.mrf.mxu0  ;;  %v2303_v11 = vor.u32 %v2465_v37, %v2300_v15  ;;  %v2443_v34 = vld [vmem:[#allocation5 + $0x1b4] sm:$0xf] }
 0x122   : > { %v723_v28 = vpop.f32.mrf.mxu3  ;;  %1400 = vmatmul.bf16.gmra.mxu0 %v3086_v30  ;;  %v3094_v39 = vpop.f32.mrf.mxu1  ;;  %1582 = vmatpush.bf16.msra.mxu2 %v2167_v58  ;;  %v2441_v58 = vld [vmem:[#allocation5 + $0x1a4] sm:$0xf] }
 0x123   : > { %v3088_v35 = vpack.c.bf16 %v723_v28, %v721_v13  ;;  %v2372_v13 = vld [vmem:[#allocation5 + $0x2f8] sm:$0xf0]  ;;  %1647 = vmatpush.bf16.msra.mxu0 %v2303_v11  ;;  %1616 = vmatpush.bf16.msra.mxu3 %v2223_v7  ;;  %v2207_v41 = vor.u32 %v2441_v58, %v2204_v40  ;;  %v2284_v11 = vld [vmem:[#allocation5 + $0x248] sm:$0xf0] }
 0x124   : > { %v2375_v20 = vor.u32 %v2483_v12, %v2372_v13  ;;  %v2356_v12 = vld [vmem:[#allocation5 + $0x2d8] sm:$0xf0]  ;;  %v2268_v58 = vld [vmem:[#allocation5 + $0x228] sm:$0xf0] }
 0x125   : > { %1433 = vmatmul.bf16.gmra.mxu1 %v3088_v35 }
 0x126   : > { %1679 = vmatpush.bf16.msra.mxu1 %v2375_v20  ;;  %v2359_v20 = vor.u32 %v2479_v9, %v2356_v12  ;;  %v2188_v9 = vld [vmem:[#allocation5 + $0x188] sm:$0xf0] }
 0x127   : > { %v693_v47 = vpop.f32.mrf.mxu2 }
 0x129   : > { %v3104_v51 = vpop.f32.mrf.mxu0 }
 0x12a   : > { %v726_v48 = vpop.f32.mrf.mxu3  ;;  %v3108_v60 = vpop.f32.mrf.mxu1  ;;  %1680 = vmatpush.bf16.msra.mxu1 %v2367_v45  ;;  %v3144_v5 = vpack.c.bf16 %v3104_v51, %v3091_v29  ;;  %v2212_v29 = vld [vmem:[#allocation5 + $0x1b8] sm:$0xf0]  ;;  %v2423_v45 = vld [vmem:[#allocation5 + $0x114] sm:$0xf] }
 0x12b   : > { %v3148_v8 = vpack.c.bf16 %v3108_v60, %v3094_v39  ;;  %v2215_v51 = vor.u32 %v2443_v34, %v2212_v29  ;;  %v2425_v39 = vld [vmem:[#allocation5 + $0x124] sm:$0xf]  ;;  %v2140_v60 = vld [vmem:[#allocation5 + $0x128] sm:$0xf0]  ;;  %v2276_v34 = vld [vmem:[#allocation5 + $0x238] sm:$0xf0] }
 0x12c   : > { %1456 = vmatmul.bf16.vlgmr.msrb.gmra.mxu2 %v3098_v49  ;;  %v2143_v15 = vor.u32 %v2425_v39, %v2140_v60  ;;  %v2457_v60 = vld [vmem:[#allocation5 + $0x224] sm:$0xf] }
 0x12d   : > { %1489 = vmatmul.bf16.vlgmr.msrb.gmra.mxu3 %v3102_v50  ;;  %v2271_v40 = vor.u32 %v2457_v60, %v2268_v58 }
 0x12e   : > { %1681 = vmatpush.bf16.msra.mxu1 %v2359_v20  ;;  %1617 = vmatpush.bf16.msra.mxu3 %v2215_v51  ;;  %v3167_v20 = vld [vmem:[%s3474_s2] sm:$0x3] }
 0x12f   : > { %v695_v61 = vpop.f32.mrf.mxu2 }
 0x130   : > { %v3110_v57 = vpack.c.bf16 %v695_v61, %v693_v47  ;;  %v2429_v47 = vld [vmem:[#allocation5 + $0x144] sm:$0xf]  ;;  %v2463_v61 = vld [vmem:[#allocation5 + $0x254] sm:$0xf] }
 0x131   : > { %v3116_v31 = vpop.f32.mrf.mxu0  ;;  %v2295_v59 = vor.u32 %v2463_v61, %v2292_v55  ;;  %v2439_v61 = vld [vmem:[#allocation5 + $0x194] sm:$0xf] }
 0x132   : > { %v728_v19 = vpop.f32.mrf.mxu3  ;;  %1405 = vmatmul.bf16.gmra.mxu0 %v3110_v57  ;;  %v3122_v25 = vpop.f32.mrf.mxu1  ;;  %1618 = vmatpush.bf16.msra.mxu3 %v2207_v41  ;;  %v2332_v41 = vld [vmem:[#allocation5 + $0x2a8] sm:$0xf0] }
 0x133   : > { %v3112_v10 = vpack.c.bf16 %v728_v19, %v726_v48  ;;  %v2156_v48 = vld [vmem:[#allocation5 + $0x148] sm:$0xf0]  ;;  %1648 = vmatpush.bf16.msra.mxu0 %v2295_v59 }
 0x134   : > { %v2159_v33 = vor.u32 %v2429_v47, %v2156_v48  ;;  %v2132_v48 = vld [vmem:[#allocation5 + $0x118] sm:$0xf0] }
 0x135   : > { %1438 = vmatmul.bf16.gmra.mxu1 %v3112_v10  ;;  %v2135_v55 = vor.u32 %v2423_v45, %v2132_v48  ;;  %v2260_v45 = vld [vmem:[#allocation5 + $0x218] sm:$0xf0] }
 0x136   : > { %1583 = vmatpush.bf16.msra.mxu2 %v2159_v33  ;;  %v2196_v33 = vld [vmem:[#allocation5 + $0x198] sm:$0xf0] }
 0x137   : > { %v698_v21 = vpop.f32.mrf.mxu2  ;;  %v2199_v59 = vor.u32 %v2439_v61, %v2196_v33 }
 0x138   : > { %v3132_v38 = vpack.c.bf16 %v698_v21, %v698_v21  ;;  %v2427_v21 = vld [vmem:[#allocation5 + $0x134] sm:$0xf] }
 0x139   : > { %v3128_v28 = vpop.f32.mrf.mxu0  ;;  %1619 = vmatpush.bf16.msra.mxu3 %v2199_v59  ;;  %v2324_v59 = vld [vmem:[#allocation5 + $0x298] sm:$0xf0] }
 0x13a   : > { %v731_v22 = vpop.f32.mrf.mxu3  ;;  %v3137_v46 = vpop.f32.mrf.mxu1 }
 0x13b   : > { %v3134_v52 = vpack.c.bf16 %v731_v22, %v731_v22  ;;  %v2148_v22 = vld [vmem:[#allocation5 + $0x138] sm:$0xf0]  ;;  %v3162_v12 = vpack.c.bf16 %v3137_v46, %v3122_v25  ;;  %v2475_v25 = vld [vmem:[#allocation5 + $0x2b4] sm:$0xf] }
 0x13c   : > { %1461 = vmatmul.bf16.gmra.mxu2 %v3120_v24  ;;  %v2151_v37 = vor.u32 %v2427_v21, %v2148_v22  ;;  %v2191_v21 = vor.u32 %v2437_v2, %v2188_v9  ;;  %v2459_v22 = vld [vmem:[#allocation5 + $0x234] sm:$0xf]  ;;  %v2453_v9 = vld [vmem:[#allocation5 + $0x204] sm:$0xf] }
 0x13d   : > { %1494 = vmatmul.bf16.gmra.mxu3 %v3126_v27 }
 0x13e   : > { %1584 = vmatpush.bf16.msra.mxu2 %v2151_v37  ;;  %1620 = vmatpush.bf16.msra.mxu3 %v2191_v21  ;;  %v2252_v21 = vld [vmem:[#allocation5 + $0x208] sm:$0xf0] }
 0x13f   : > { %v700_v42 = vpop.f32.mrf.mxu2 }
 0x140   : > { %v2461_v42 = vld [vmem:[#allocation5 + $0x244] sm:$0xf] }
 0x141   : > { %v3140_v19 = vpop.f32.mrf.mxu0  ;;  %v2287_v53 = vor.u32 %v2461_v42, %v2284_v11 }
 0x142   : > { %v733_v44 = vpop.f32.mrf.mxu3  ;;  %1410 = vmatmul.bf16.gmra.mxu0 %v3132_v38  ;;  %v3150_v13 = vpop.f32.mrf.mxu1  ;;  %1585 = vmatpush.bf16.msra.mxu2 %v2143_v15  ;;  %v2473_v15 = vld [vmem:[#allocation5 + $0x2a4] sm:$0xf] }
 0x143   : > { %v2348_v44 = vld [vmem:[#allocation5 + $0x2c8] sm:$0xf0]  ;;  %1649 = vmatpush.bf16.msra.mxu0 %v2287_v53  ;;  %v2335_v42 = vor.u32 %v2473_v15, %v2332_v41 }
 0x144   : > { %v2351_v47 = vor.u32 %v2477_v43, %v2348_v44  ;;  %v2455_v44 = vld [vmem:[#allocation5 + $0x214] sm:$0xf] }
 0x145   : > { %1443 = vmatmul.bf16.gmra.mxu1 %v3134_v52 }
 0x146   : > { %1682 = vmatpush.bf16.msra.mxu1 %v2351_v47  ;;  %1586 = vmatpush.bf16.msra.mxu2 %v2135_v55  ;;  %v2263_v47 = vor.u32 %v2455_v44, %v2260_v45  ;;  %v2471_v55 = vld [vmem:[#allocation5 + $0x294] sm:$0xf] }
 0x149   : > { %v766_v36 = vpop.f32.mrf.mxu0 }
 0x14a   : > { %v799_v17 = vpop.f32.mrf.mxu1  ;;  %v2279_v36 = vor.u32 %v2459_v22, %v2276_v34  ;;  %v2469_v22 = vld [vmem:[#allocation5 + $0x284] sm:$0xf]  ;;  %v2255_v34 = vor.u32 %v2453_v9, %v2252_v21 }
 0x14b   : > { %v3179_v17 = vpack.c.bf16 %v3140_v19, %v3140_v19 }
 0x14c   : > { %1466 = vmatmul.bf16.gmra.mxu2 %v3144_v5  ;;  %1650 = vmatpush.bf16.msra.mxu0 %v2279_v36  ;;  %v2316_v36 = vld [vmem:[#allocation5 + $0x288] sm:$0xf0] }
 0x14d   : > { %1499 = vmatmul.bf16.gmra.mxu3 %v3148_v8 }
 0x150   : > { %1651 = vmatpush.bf16.msra.mxu0 %v2271_v40 }
 0x152   : > { %1522 = vmatmul.bf16.vlgmr.msrb.gmra.mxu0 %v3012_v63  ;;  %v2421_v63 = vld [vmem:[#allocation5 + $0x104] sm:$0xf] }
 0x153   : > { %v2127_v7 = vor.u32 %v2421_v63, %v2124_v1 }
 0x154   : > { %1652 = vmatpush.bf16.msra.mxu0 %v2263_v47 }
 0x155   : > { %1555 = vmatmul.bf16.vlgmr.msrb.gmra.mxu1 %v3014_v6  ;;  %v3158_v6 = vpack.c.bf16 %v3128_v28, %v3116_v31  ;;  %1587 = vmatpush.bf16.msra.mxu2 %v2127_v7  ;;  %v3171_v31 = vperm.slane %v3167_v20, 0  ;;  %v2340_v28 = vld [vmem:[#allocation5 + $0x2b8] sm:$0xf0] }
 0x156   : > { %v2343_v46 = vor.u32 %v2475_v25, %v2340_v28  ;;  %v2319_v25 = vor.u32 %v2469_v22, %v2316_v36 }
 0x158   : > { %1683 = vmatpush.bf16.msra.mxu1 %v2343_v46  ;;  %1653 = vmatpush.bf16.msra.mxu0 %v2255_v34 }
 0x15c   : > { %1471 = vmatmul.bf16.gmra.mxu2 %v3158_v6  ;;  %1684 = vmatpush.bf16.msra.mxu1 %v2335_v42 }
 0x15d   : > { %1504 = vmatmul.bf16.gmra.mxu3 %v3162_v12 }
 0x15f   : > { %v1325_v37 = vpop.f32.mrf.mxu2 }
 0x160   : > { %v1326_v29 = vadd.f32 %v1325_v37, %v3171_v31  ;;  %v1358_v51 = vpop.f32.mrf.mxu3 }
 0x162   : > { %v1359_v39 = vadd.f32 %v1358_v51, %v1326_v29  ;;  %1527 = vmatmul.bf16.gmra.mxu0 %v3026_v0  ;;  %v3184_v0 = vpack.c.bf16 %v3150_v13, %v3150_v13  ;;  %v2327_v13 = vor.u32 %v2471_v55, %v2324_v59 }
 0x164   : > { %1685 = vmatpush.bf16.msra.mxu1 %v2327_v13 }
 0x165   : > { %1560 = vmatmul.bf16.gmra.mxu1 %v3028_v32 }
 0x167   : > { %v1327_v11 = vpop.f32.mrf.mxu2 }
 0x168   : > { %v1328_v53 = vadd.f32 %v1327_v11, %v3171_v31  ;;  %v1360_v43 = vpop.f32.mrf.mxu3  ;;  %1686 = vmatpush.bf16.msra.mxu1 %v2319_v25 }
 0x16a   : > { %v1361_v32 = vadd.f32 %v1360_v43, %v1328_v53 }
 0x16c   : > { %1476 = vmatmul.bf16.gmra.mxu2 %v3179_v17 }
 0x16d   : > { %1509 = vmatmul.bf16.gmra.mxu3 %v3184_v0 }
 0x16f   : > { %v1330_v48 = vpop.f32.mrf.mxu2 }
 0x170   : > { %v1331_v61 = vadd.f32 %v1330_v48, %v3171_v31  ;;  %v1363_v19 = vpop.f32.mrf.mxu3 }
 0x172   : > { %v1364_v33 = vadd.f32 %v1363_v19, %v1331_v61  ;;  %1532 = vmatmul.bf16.gmra.mxu0 %v3032_v3 }
 0x175   : > { %1565 = vmatmul.bf16.gmra.mxu1 %v3034_v4 }
 0x177   : > { %v1332_v63 = vpop.f32.mrf.mxu2 }
 0x178   : > { %v1333_v1 = vadd.f32 %v1332_v63, %v3171_v31  ;;  %v1365_v2 = vpop.f32.mrf.mxu3 }
 0x17a   : > { %v1366_v7 = vadd.f32 %v1365_v2, %v1333_v1 }
 0x17c   : > { %1588 = vmatmul.bf16.vlgmr.msra.gmra.mxu2 %v3038_v18 }
 0x17d   : > { %1621 = vmatmul.bf16.vlgmr.msra.gmra.mxu3 %v3040_v26 }
 0x17f   : > { %v1335_v3 = vpop.f32.mrf.mxu2  ;;  %v1391_v4 = vpop.f32.mrf.mxu0 }
 0x180   : > { %v1336_v28 = vadd.f32 %v1335_v3, %v3171_v31  ;;  %v1368_v46 = vpop.f32.mrf.mxu3  ;;  %v1392_v37 = vadd.f32 %v1391_v4, %v1359_v39 }
 0x182   : > { %v1424_v29 = vpop.f32.mrf.mxu1  ;;  %v1369_v51 = vadd.f32 %v1368_v46, %v1336_v28  ;;  %1537 = vmatmul.bf16.gmra.mxu0 %v3050_v54 }
 0x183   : > { %v1425_v60 = vadd.f32 %v1424_v29, %v1392_v37 }
 0x185   : > { %1570 = vmatmul.bf16.gmra.mxu1 %v3056_v56 }
 0x187   : > { %v1337_v58 = vpop.f32.mrf.mxu2  ;;  %v1393_v18 = vpop.f32.mrf.mxu0 }
 0x188   : > { %v1338_v15 = vadd.f32 %v1337_v58, %v3171_v31  ;;  %v1370_v26 = vpop.f32.mrf.mxu3  ;;  %v1394_v40 = vadd.f32 %v1393_v18, %v1361_v32 }
 0x18a   : > { %v1426_v41 = vpop.f32.mrf.mxu1  ;;  %v1371_v42 = vadd.f32 %v1370_v26, %v1338_v15  ;;  %v407_v15 = vld [vmem:[%s3476_s4 + $0x60] sm:$0xff]  ;;  %v406_v26 = vld [vmem:[%s3476_s4 + $0x58] sm:$0xff] }
 0x18b   : > { %v1427_v11 = vadd.f32 %v1426_v41, %v1394_v40 }
 0x18c   : > { %1593 = vmatmul.bf16.gmra.mxu2 %v3062_v62 }
 0x18d   : > { %1626 = vmatmul.bf16.gmra.mxu3 %v3064_v23 }
 0x18f   : > { %v1340_v39 = vpop.f32.mrf.mxu2  ;;  %v1396_v53 = vpop.f32.mrf.mxu0 }
 0x190   : > { %v1373_v43 = vpop.f32.mrf.mxu3  ;;  %v1397_v44 = vadd.f32 %v1396_v53, %v1364_v33  ;;  %v404_v53 = vld [vmem:[%s3476_s4 + $0x48] sm:$0xff] }
 0x192   : > { %v1429_v54 = vpop.f32.mrf.mxu1  ;;  %1542 = vmatmul.bf16.gmra.mxu0 %v3074_v14 }
 0x193   : > { %v3200_v45 = vadd.f32 %v1429_v54, %v1397_v44  ;;  %v402_v44 = vld [vmem:[%s3476_s4 + $0x38] sm:$0xff] }
 0x195   : > { %1575 = vmatmul.bf16.gmra.mxu1 %v3080_v16 }
 0x197   : > { %v1342_v56 = vpop.f32.mrf.mxu2  ;;  %v1398_v32 = vpop.f32.mrf.mxu0 }
 0x198   : > { %v1375_v47 = vpop.f32.mrf.mxu3  ;;  %v1399_v48 = vadd.f32 %v1398_v32, %v1366_v7  ;;  %v1341_v7 = vadd.f32 %v1340_v39, %v3171_v31  ;;  %v1343_v3 = vadd.f32 %v1342_v56, %v3171_v31  ;;  %v401_v56 = vld [vmem:[%s3476_s4 + $0x30] sm:$0xff] }
 0x19a   : > { %v1431_v61 = vpop.f32.mrf.mxu1  ;;  %v1374_v21 = vadd.f32 %v1373_v43, %v1341_v7  ;;  %v403_v43 = vld [vmem:[%s3476_s4 + $0x40] sm:$0xff] }
 0x19b   : > { %v3204_v19 = vadd.f32 %v1431_v61, %v1399_v48  ;;  %v399_v61 = vld [vmem:[%s3476_s4 + $0x20] sm:$0xff] }
 0x19c   : > { %1598 = vmatmul.bf16.gmra.mxu2 %v3086_v30 }
 0x19d   : > { %1631 = vmatmul.bf16.gmra.mxu3 %v3088_v35 }
 0x19f   : > { %v1345_v62 = vpop.f32.mrf.mxu2  ;;  %v1401_v23 = vpop.f32.mrf.mxu0 }
 0x1a0   : > { %v1346_v33 = vadd.f32 %v1345_v62, %v3171_v31  ;;  %v1378_v55 = vpop.f32.mrf.mxu3  ;;  %v1402_v59 = vadd.f32 %v1401_v23, %v1369_v51  ;;  %v409_v31 = vld [vmem:[%s3476_s4 + $0x70] sm:$0xff]  ;;  %v3282_v62 = vperm.slane %v3167_v20, 1  ;;  %v396_v20 = vld [vmem:[%s3476_s4 + $0x8] sm:$0xff] }
 0x1a2   : > { %v1434_v14 = vpop.f32.mrf.mxu1  ;;  %v3209_v13 = vadd.f32 %v1378_v55, %v1346_v33  ;;  %1654 = vmatmul.bf16.vlgmr.msra.gmra.mxu0 %v3098_v49  ;;  %v397_v55 = vld [vmem:[%s3476_s4 + $0x10] sm:$0xff] }
 0x1a3   : > { %v3211_v16 = vadd.f32 %v1434_v14, %v1402_v59 }
 0x1a5   : > { %1687 = vmatmul.bf16.vlgmr.msra.gmra.mxu1 %v3102_v50 }
 0x1a7   : > { %v1347_v63 = vpop.f32.mrf.mxu2  ;;  %v1403_v1 = vpop.f32.mrf.mxu0 }
 0x1a8   : > { %v1380_v30 = vpop.f32.mrf.mxu3  ;;  %v1404_v2 = vadd.f32 %v1403_v1, %v1371_v42  ;;  %v405_v42 = vld [vmem:[%s3476_s4 + $0x50] sm:$0xff] }
 0x1aa   : > { %v1436_v35 = vpop.f32.mrf.mxu1 }
 0x1ab   : > { %v3216_v9 = vadd.f32 %v1436_v35, %v1404_v2  ;;  %v395_v35 = vld [vmem:[%s3476_s4] sm:$0xff] }
 0x1ac   : > { %1603 = vmatmul.bf16.gmra.mxu2 %v3110_v57  ;;  %v410_v57 = vld [vmem:[%s3476_s4 + $0x78] sm:$0xff] }
 0x1ad   : > { %1636 = vmatmul.bf16.gmra.mxu3 %v3112_v10  ;;  %1712 = vmatpush.msrb.mxu2 %v410_v57  ;;  %v1376_v10 = vadd.f32 %v1375_v47, %v1343_v3  ;;  %v400_v47 = vld [vmem:[%s3476_s4 + $0x28] sm:$0xff] }
 0x1af   : > { %v1406_v22 = vpop.f32.mrf.mxu0  ;;  %v1457_v34 = vpop.f32.mrf.mxu2  ;;  %1713 = vmatpush.msrb.mxu2 %v409_v31 }
 0x1b0   : > { %v1407_v36 = vadd.f32 %v1406_v22, %v1374_v21  ;;  %v1458_v25 = vadd.f32 %v1457_v34, %v1425_v60  ;;  %v1490_v50 = vpop.f32.mrf.mxu3 }
 0x1b2   : > { %v1439_v49 = vpop.f32.mrf.mxu1  ;;  %v3223_v28 = vadd.f32 %v1490_v50, %v1458_v25  ;;  %1659 = vmatmul.bf16.gmra.mxu0 %v3120_v24  ;;  %v408_v24 = vld [vmem:[%s3476_s4 + $0x68] sm:$0xff] }
 0x1b3   : > { %v3221_v4 = vadd.f32 %v1439_v49, %v1407_v36  ;;  %1714 = vmatpush.msrb.mxu2 %v408_v24 }
 0x1b5   : > { %1692 = vmatmul.bf16.gmra.mxu1 %v3126_v27  ;;  %1715 = vmatpush.msrb.mxu2 %v407_v15 }
 0x1b7   : > { %v1408_v46 = vpop.f32.mrf.mxu0  ;;  %v1459_v37 = vpop.f32.mrf.mxu2  ;;  %1716 = vmatpush.msrb.mxu2 %v406_v26 }
 0x1b8   : > { %v1409_v29 = vadd.f32 %v1408_v46, %v1376_v10  ;;  %v1460_v60 = vadd.f32 %v1459_v37, %v1427_v11  ;;  %v1492_v58 = vpop.f32.mrf.mxu3 }
 0x1b9   : > { %1717 = vmatpush.msrb.mxu2 %v405_v42 }
 0x1ba   : > { %v1441_v51 = vpop.f32.mrf.mxu1  ;;  %v3238_v18 = vadd.f32 %v1492_v58, %v1460_v60 }
 0x1bb   : > { %v3236_v27 = vadd.f32 %v1441_v51, %v1409_v29  ;;  %1718 = vmatpush.msrb.mxu2 %v404_v53 }
 0x1bc   : > { %1608 = vmatmul.bf16.gmra.mxu2 %v3132_v38 }
 0x1bd   : > { %1641 = vmatmul.bf16.gmra.mxu3 %v3134_v52  ;;  %1719 = vmatpush.msrb.mxu2 %v403_v43  ;;  %v426_v43 = vld [vmem:[%s3476_s4 + $0xf8] sm:$0xff] }
 0x1be   : > { %1732 = vmatpush.msrb.mxu3 %v426_v43 }
 0x1bf   : > { %v3248_v40 = vpop.f32.mrf.mxu0  ;;  %v1462_v41 = vpop.f32.mrf.mxu2  ;;  %1720 = vmatpush.msrb.mxu2 %v402_v44 }
 0x1c0   : > { %v1463_v39 = vadd.f32 %v1462_v41, %v3200_v45  ;;  %v1495_v38 = vpop.f32.mrf.mxu3 }
 0x1c1   : > { %1721 = vmatpush.msrb.mxu2 %v401_v56  ;;  %v425_v56 = vld [vmem:[%s3476_s4 + $0xf0] sm:$0xff] }
 0x1c2   : > { %v3253_v11 = vpop.f32.mrf.mxu1  ;;  %v3259_v52 = vadd.f32 %v1495_v38, %v1463_v39  ;;  %1664 = vmatmul.bf16.gmra.mxu0 %v3144_v5  ;;  %1733 = vmatpush.msrb.mxu3 %v425_v56 }
 0x1c3   : > { %1722 = vmatpush.msrb.mxu2 %v400_v47 }
 0x1c5   : > { %1697 = vmatmul.bf16.gmra.mxu1 %v3148_v8  ;;  %1723 = vmatpush.msrb.mxu2 %v399_v61 }
 0x1c7   : > { %v1413_v54 = vpop.f32.mrf.mxu0  ;;  %v1464_v45 = vpop.f32.mrf.mxu2 }
 0x1c8   : > { %v1465_v8 = vadd.f32 %v1464_v45, %v3204_v19  ;;  %v1497_v32 = vpop.f32.mrf.mxu3  ;;  %v398_v19 = vld [vmem:[%s3476_s4 + $0x18] sm:$0xff] }
 0x1c9   : > { %1724 = vmatpush.msrb.mxu2 %v398_v19 }
 0x1ca   : > { %v1446_v5 = vpop.f32.mrf.mxu1  ;;  %v3276_v48 = vadd.f32 %v1497_v32, %v1465_v8 }
 0x1cb   : > { %1725 = vmatpush.msrb.mxu2 %v397_v55  ;;  %v424_v5 = vld [vmem:[%s3476_s4 + $0xe8] sm:$0xff] }
 0x1cc   : > { %1734 = vmatpush.msrb.mxu3 %v424_v5  ;;  %v415_v5 = vld [vmem:[%s3476_s4 + $0xa0] sm:$0xff] }
 0x1cd   : > { %1726 = vmatpush.msrb.mxu2 %v396_v20 }
 0x1cf   : > { %v1467_v23 = vpop.f32.mrf.mxu2  ;;  %v1523_v33 = vpop.f32.mrf.mxu0  ;;  %1727 = vmatpush.msrb.mxu2 %v395_v35 }
 0x1d0   : > { %v1468_v59 = vadd.f32 %v1467_v23, %v3211_v16  ;;  %v1500_v14 = vpop.f32.mrf.mxu3  ;;  %v1524_v63 = vadd.f32 %v1523_v33, %v3282_v62 }
 0x1d2   : > { %v1556_v1 = vpop.f32.mrf.mxu1  ;;  %v3295_v30 = vadd.f32 %v1500_v14, %v1468_v59  ;;  %1669 = vmatmul.bf16.gmra.mxu0 %v3158_v6  ;;  %v423_v59 = vld [vmem:[%s3476_s4 + $0xe0] sm:$0xff] }
 0x1d3   : > { %v1557_v2 = vadd.f32 %v1556_v1, %v1524_v63  ;;  %1735 = vmatpush.msrb.mxu3 %v423_v59 }
 0x1d5   : > { %1702 = vmatmul.bf16.gmra.mxu1 %v3162_v12 }
 0x1d7   : > { %v1469_v16 = vpop.f32.mrf.mxu2  ;;  %v1525_v7 = vpop.f32.mrf.mxu0 }
 0x1d8   : > { %v1470_v21 = vadd.f32 %v1469_v16, %v3216_v9  ;;  %v1502_v22 = vpop.f32.mrf.mxu3  ;;  %v1526_v34 = vadd.f32 %v1525_v7, %v3282_v62 }
 0x1da   : > { %v1558_v36 = vpop.f32.mrf.mxu1  ;;  %v3304_v49 = vadd.f32 %v1502_v22, %v1470_v21  ;;  %v421_v22 = vld [vmem:[%s3476_s4 + $0xd0] sm:$0xff] }
 0x1db   : > { %v1559_v25 = vadd.f32 %v1558_v36, %v1526_v34 }
 0x1df   : > { %v1472_v6 = vpop.f32.mrf.mxu2  ;;  %v1528_v50 = vpop.f32.mrf.mxu0 }
 0x1e0   : > { %v1473_v3 = vadd.f32 %v1472_v6, %v3221_v4  ;;  %v1505_v57 = vpop.f32.mrf.mxu3  ;;  %v1529_v12 = vadd.f32 %v1528_v50, %v3282_v62  ;;  %v1412_v4 = vadd.f32 %v3248_v40, %v3209_v13 }
 0x1e2   : > { %v1561_v10 = vpop.f32.mrf.mxu1  ;;  %v3308_v46 = vadd.f32 %v1505_v57, %v1473_v3  ;;  %1674 = vmatmul.bf16.gmra.mxu0 %v3179_v17  ;;  %v1445_v26 = vadd.f32 %v3253_v11, %v1412_v4 }
 0x1e3   : > { %v1562_v37 = vadd.f32 %v1561_v10, %v1529_v12  ;;  %v420_v10 = vld [vmem:[%s3476_s4 + $0xc8] sm:$0xff] }
 0x1e5   : > { %1707 = vmatmul.bf16.gmra.mxu1 %v3184_v0 }
 0x1e7   : > { %v1474_v9 = vpop.f32.mrf.mxu2  ;;  %v1530_v31 = vpop.f32.mrf.mxu0 }
 0x1e8   : > { %v1475_v29 = vadd.f32 %v1474_v9, %v3236_v27  ;;  %v1507_v51 = vpop.f32.mrf.mxu3  ;;  %v1531_v60 = vadd.f32 %v1530_v31, %v3282_v62 }
 0x1ea   : > { %v1563_v58 = vpop.f32.mrf.mxu1  ;;  %v3316_v24 = vadd.f32 %v1507_v51, %v1475_v29 }
 0x1eb   : > { %v1564_v15 = vadd.f32 %v1563_v58, %v1531_v60 }
 0x1ef   : > { %v1477_v41 = vpop.f32.mrf.mxu2  ;;  %v1533_v17 = vpop.f32.mrf.mxu0 }
 0x1f0   : > { %v1478_v42 = vadd.f32 %v1477_v41, %v1445_v26  ;;  %v1510_v0 = vpop.f32.mrf.mxu3  ;;  %v1534_v39 = vadd.f32 %v1533_v17, %v3282_v62 }
 0x1f2   : > { %v1566_v38 = vpop.f32.mrf.mxu1  ;;  %v1511_v27 = vadd.f32 %v1510_v0, %v1478_v42 }
 0x1f3   : > { %v1567_v53 = vadd.f32 %v1566_v38, %v1534_v39  ;;  %v417_v38 = vld [vmem:[%s3476_s4 + $0xb0] sm:$0xff] }
 0x1f4   : > { %1728 = vmatmul.f32.vlgmr.msrb.gmra.mxu2 %v1511_v27  ;;  %v416_v27 = vld [vmem:[%s3476_s4 + $0xa8] sm:$0xff] }
 0x1f7   : > { %v1479_v13 = vpop.f32.mrf.mxu2  ;;  %v1535_v40 = vpop.f32.mrf.mxu0 }
 0x1f8   : > { %v1512_v44 = vpop.f32.mrf.mxu3  ;;  %v1536_v11 = vadd.f32 %v1535_v40, %v3282_v62 }
 0x1fa   : > { %v1568_v54 = vpop.f32.mrf.mxu1 }
 0x1fb   : > { %v1569_v45 = vadd.f32 %v1568_v54, %v1536_v11 }
 0x1ff   : > { %v1538_v8 = vpop.f32.mrf.mxu0  ;;  %v1589_v32 = vpop.f32.mrf.mxu2 }
 0x200   : > { %v1539_v47 = vadd.f32 %v1538_v8, %v3282_v62  ;;  %v1590_v19 = vadd.f32 %v1589_v32, %v1557_v2  ;;  %v1622_v23 = vpop.f32.mrf.mxu3  ;;  %v422_v2 = vld [vmem:[%s3476_s4 + $0xd8] sm:$0xff] }
 0x201   : > { %1736 = vmatpush.msrb.mxu3 %v422_v2 }
 0x202   : > { %v1571_v61 = vpop.f32.mrf.mxu1  ;;  %v1623_v55 = vadd.f32 %v1622_v23, %v1590_v19 }
 0x203   : > { %v1572_v33 = vadd.f32 %v1571_v61, %v1539_v47  ;;  %1737 = vmatpush.msrb.mxu3 %v421_v22  ;;  %v412_v22 = vld [vmem:[%s3476_s4 + $0x88] sm:$0xff] }
 0x205   : > { %1738 = vmatpush.msrb.mxu3 %v420_v10 }
 0x207   : > { %v1540_v14 = vpop.f32.mrf.mxu0  ;;  %v1591_v63 = vpop.f32.mrf.mxu2 }
 0x208   : > { %v1541_v1 = vadd.f32 %v1540_v14, %v3282_v62  ;;  %v1592_v35 = vadd.f32 %v1591_v63, %v1559_v25  ;;  %v1624_v16 = vpop.f32.mrf.mxu3  ;;  %v413_v14 = vld [vmem:[%s3476_s4 + $0x90] sm:$0xff] }
 0x20a   : > { %v1573_v20 = vpop.f32.mrf.mxu1  ;;  %v1625_v21 = vadd.f32 %v1624_v16, %v1592_v35 }
 0x20b   : > { %v1574_v7 = vadd.f32 %v1573_v20, %v1541_v1 }
 0x20f   : > { %v1543_v34 = vpop.f32.mrf.mxu0  ;;  %v1594_v36 = vpop.f32.mrf.mxu2 }
 0x210   : > { %v1544_v6 = vadd.f32 %v1543_v34, %v3282_v62  ;;  %v1595_v3 = vadd.f32 %v1594_v36, %v1562_v37  ;;  %v1627_v25 = vpop.f32.mrf.mxu3  ;;  %v419_v62 = vld [vmem:[%s3476_s4 + $0xc0] sm:$0xff]  ;;  %v418_v37 = vld [vmem:[%s3476_s4 + $0xb8] sm:$0xff] }
 0x211   : > { %1739 = vmatpush.msrb.mxu3 %v419_v62 }
 0x212   : > { %v1576_v50 = vpop.f32.mrf.mxu1  ;;  %v1628_v12 = vadd.f32 %v1627_v25, %v1595_v3 }
 0x213   : > { %v3342_v57 = vadd.f32 %v1576_v50, %v1544_v6  ;;  %1740 = vmatpush.msrb.mxu3 %v418_v37 }
 0x215   : > { %1741 = vmatpush.msrb.mxu3 %v417_v38 }
 0x217   : > { %v1545_v9 = vpop.f32.mrf.mxu0  ;;  %v1596_v31 = vpop.f32.mrf.mxu2  ;;  %1742 = vmatpush.msrb.mxu3 %v416_v27 }
 0x218   : > { %v1597_v51 = vadd.f32 %v1596_v31, %v1564_v15  ;;  %v1629_v60 = vpop.f32.mrf.mxu3 }
 0x219   : > { %1743 = vmatpush.msrb.mxu3 %v415_v5 }
 0x21a   : > { %v1578_v29 = vpop.f32.mrf.mxu1  ;;  %v1630_v58 = vadd.f32 %v1629_v60, %v1597_v51 }
 0x21f   : > { %v1599_v4 = vpop.f32.mrf.mxu2  ;;  %v1655_v26 = vpop.f32.mrf.mxu0 }
 0x220   : > { %v1600_v41 = vadd.f32 %v1599_v4, %v1567_v53  ;;  %v1632_v17 = vpop.f32.mrf.mxu3  ;;  %v1656_v42 = vadd.f32 %v1655_v26, %v1623_v55  ;;  %v429_v26 = vld [vmem:[%s3477_s5 + $0x10] sm:$0xff] }
 0x221   : > { %1771 = vmatpush.msra.mxu2 %v429_v26 }
 0x222   : > { %v1688_v0 = vpop.f32.mrf.mxu1  ;;  %v1633_v39 = vadd.f32 %v1632_v17, %v1600_v41  ;;  %v430_v41 = vld [vmem:[%s3477_s5 + $0x18] sm:$0xff] }
 0x223   : > { %v3353_v15 = vadd.f32 %v1688_v0, %v1656_v42 }
 0x227   : > { %v1601_v43 = vpop.f32.mrf.mxu2  ;;  %v1657_v13 = vpop.f32.mrf.mxu0 }
 0x228   : > { %v1602_v40 = vadd.f32 %v1601_v43, %v1569_v45  ;;  %v1634_v53 = vpop.f32.mrf.mxu3  ;;  %v1658_v44 = vadd.f32 %v1657_v13, %v1625_v21  ;;  %v414_v45 = vld [vmem:[%s3476_s4 + $0x98] sm:$0xff] }
 0x229   : > { %1744 = vmatpush.msrb.mxu3 %v414_v45 }
 0x22a   : > { %v1690_v11 = vpop.f32.mrf.mxu1  ;;  %v1635_v54 = vadd.f32 %v1634_v53, %v1602_v40 }
 0x22b   : > { %v3361_v56 = vadd.f32 %v1690_v11, %v1658_v44  ;;  %1745 = vmatpush.msrb.mxu3 %v413_v14  ;;  %v427_v11 = vld [vmem:[%s3477_s5] sm:$0xff] }
 0x22c   : > { %1772 = vmatpush.msra.mxu2 %v427_v11 }
 0x22d   : > { %1746 = vmatpush.msrb.mxu3 %v412_v22 }
 0x22f   : > { %v1604_v8 = vpop.f32.mrf.mxu2  ;;  %v1660_v32 = vpop.f32.mrf.mxu0 }
 0x230   : > { %v1605_v47 = vadd.f32 %v1604_v8, %v1572_v33  ;;  %v1637_v61 = vpop.f32.mrf.mxu3  ;;  %v1661_v19 = vadd.f32 %v1660_v32, %v1628_v12 }
 0x232   : > { %v1693_v23 = vpop.f32.mrf.mxu1  ;;  %v1638_v55 = vadd.f32 %v1637_v61, %v1605_v47 }
 0x233   : > { %v3366_v59 = vadd.f32 %v1693_v23, %v1661_v19 }
 0x237   : > { %v1606_v63 = vpop.f32.mrf.mxu2  ;;  %v1662_v1 = vpop.f32.mrf.mxu0 }
 0x238   : > { %v1607_v20 = vadd.f32 %v1606_v63, %v1574_v7  ;;  %v1639_v33 = vpop.f32.mrf.mxu3  ;;  %v1663_v35 = vadd.f32 %v1662_v1, %v1630_v58  ;;  %v411_v7 = vld [vmem:[%s3476_s4 + $0x80] sm:$0xff] }
 0x239   : > { %1747 = vmatpush.msrb.mxu3 %v411_v7 }
 0x23a   : > { %v1695_v16 = vpop.f32.mrf.mxu1  ;;  %v1640_v21 = vadd.f32 %v1639_v33, %v1607_v20 }
 0x23b   : > { %v3374_v2 = vadd.f32 %v1695_v16, %v1663_v35  ;;  %1791 = vmatpush.msra.mxu3 %v430_v41 }
 0x23f   : > { %v1609_v34 = vpop.f32.mrf.mxu2  ;;  %v1665_v36 = vpop.f32.mrf.mxu0 }
 0x240   : > { %v1642_v6 = vpop.f32.mrf.mxu3  ;;  %v1666_v50 = vadd.f32 %v1665_v36, %v1633_v39  ;;  %v1610_v0 = vadd.f32 %v1609_v34, %v3342_v57 }
 0x242   : > { %v1698_v3 = vpop.f32.mrf.mxu1  ;;  %v1643_v38 = vadd.f32 %v1642_v6, %v1610_v0 }
 0x243   : > { %v3379_v25 = vadd.f32 %v1698_v3, %v1666_v50 }
 0x247   : > { %v1611_v12 = vpop.f32.mrf.mxu2  ;;  %v1667_v10 = vpop.f32.mrf.mxu0 }
 0x248   : > { %v1644_v9 = vpop.f32.mrf.mxu3  ;;  %v1668_v31 = vadd.f32 %v1667_v10, %v1635_v54  ;;  %v428_v54 = vld [vmem:[%s3477_s5 + $0x8] sm:$0xff] }
 0x249   : > { %1792 = vmatpush.msra.mxu3 %v428_v54 }
 0x24a   : > { %v1700_v29 = vpop.f32.mrf.mxu1 }
 0x24b   : > { %v3384_v51 = vadd.f32 %v1700_v29, %v1668_v31 }
 0x24f   : > { %v1670_v60 = vpop.f32.mrf.mxu0 }
 0x250   : > { %v1671_v58 = vadd.f32 %v1670_v60, %v1638_v55 }
 0x252   : > { %v1703_v62 = vpop.f32.mrf.mxu1 }
 0x253   : > { %v3386_v37 = vadd.f32 %v1703_v62, %v1671_v58 }
 0x257   : > { %v1672_v4 = vpop.f32.mrf.mxu0 }
 0x258   : > { %v1673_v17 = vadd.f32 %v1672_v4, %v1640_v21 }
 0x25a   : > { %v1705_v42 = vpop.f32.mrf.mxu1 }
 0x25b   : > { %v3395_v39 = vadd.f32 %v1705_v42, %v1673_v17 }
 0x25f   : > { %v1675_v27 = vpop.f32.mrf.mxu0 }
 0x260   : > { %v1676_v43 = vadd.f32 %v1675_v27, %v1643_v38 }
 0x262   : > { %v1708_v13 = vpop.f32.mrf.mxu1 }
 0x263   : > { %v1709_v40 = vadd.f32 %v1708_v13, %v1676_v43 }
 0x265   : > { %1748 = vmatmul.f32.vlgmr.msrb.gmra.mxu3 %v1709_v40 }
 0x267   : > { %v1677_v53 = vpop.f32.mrf.mxu0 }
 0x26a   : > { %v1710_v44 = vpop.f32.mrf.mxu1 }
 0x277   : > { %v1729_v57 = vpop.f32.mrf.mxu2 }
 0x2e8   : > { %v1749_v5 = vpop.f32.mrf.mxu3 }
 0x2e9   : > { %v1750_v8 = vadd.f32 %v1749_v5, %v1729_v57 }
 0x2eb   : > { %v1752_v32 = vmax.f32 %v1750_v8, 0.0 }
 0x2ed   : > { %2376 = vmatmul.msk.f32.vlgmr.msra.gmra.mxu2 %vm1753_vm0, %v1752_v32  ;;  %2377 = vmatmul.msk.f32.vlgmr.msra.gmra.mxu3 %vm1753_vm0, %v1752_v32 }
 0x370   : > { %v1774_v47 = vpop.f32.mrf.mxu2  ;;  %v1794_v61 = vpop.f32.mrf.mxu3 }
 0x371   : > { %v2378_v19 = vmul.f32 -1.442695, %v1774_v47  ;;  %v2379_v23 = vmul.f32 -1.442695, %v1794_v61 }
 0x373   : > { %2568 = vpow2.f32 %v2378_v19 }
 0x374   : > { %2570 = vpow2.f32 %v2379_v23 }
 0x379   : > { %v2569_v55 = vpop.eup %2568 }
 0x37a   : > { %v2571_v45 = vpop.eup %2570  ;;  %v1803_v14 = vadd.f32 1.0, %v2569_v55 }
 0x37b   : > { %v1804_v63 = vadd.f32 1.0, %v2571_v45 }
 0x37c   : > { %2572 = vrcp.f32 %v1803_v14  ;;  %v1816_v21 = vand.u32 2147483648, %v1803_v14  ;;  %v1814_v36 = vand.u32 2147483647, %v1803_v14  ;;  %vm1810_vm3 = vweird.f32 %v1803_v14 }
 0x37d   : > { %2574 = vrcp.f32 %v1804_v63  ;;  %v1831_v50 = vand.u32 2147483648, %v1804_v63  ;;  %v1829_v7 = vand.u32 2147483647, %v1804_v63  ;;  %vm1825_vm5 = vweird.f32 %v1804_v63 }
 0x37e   : > { %v1817_v12 = vor.u32 1.1754944e-38, %v1816_v21  ;;  %vm1815_vm6 = vcmp.eq.f32.partialorder %v1814_v36, 8.507059e+37 }
 0x37f   : > { %v1832_v60 = vor.u32 1.1754944e-38, %v1831_v50  ;;  %vm1830_vm8 = vcmp.eq.f32.partialorder %v1829_v7, 8.507059e+37 }
 0x382   : > { %v2573_v1 = vpop.eup %2572 }
 0x383   : > { %v2575_v20 = vpop.eup %2574  ;;  %v1806_v33 = vmul.f32 %v2573_v1, %v1803_v14  ;;  %vm1811_vm1 = vweird.f32 %v2573_v1 }
 0x384   : > { %v1821_v35 = vmul.f32 %v2575_v20, %v1804_v63  ;;  %vm1826_vm2 = vweird.f32 %v2575_v20  ;;  %vm1812_vm4 = vmor %vm1810_vm3, %vm1811_vm1 }
 0x385   : > { %v1807_v16 = vsub.f32 1.0, %v1806_v33  ;;  %vm1827_vm7 = vmor %vm1825_vm5, %vm1826_vm2 }
 0x386   : > { %v1822_v22 = vsub.f32 1.0, %v1821_v35 }
 0x387   : > { %v1808_v34 = vmul.f32 %v2573_v1, %v1807_v16 }
 0x388   : > { %v1823_v6 = vmul.f32 %v2575_v20, %v1822_v22 }
 0x389   : > { %v1809_v3 = vadd.f32 %v2573_v1, %v1808_v34 }
 0x38a   : > { %v1824_v10 = vadd.f32 %v2575_v20, %v1823_v6 }
 0x38b   : > { %v1813_v9 = vsel %vm1812_vm4, %v2573_v1, %v1809_v3 }
 0x38c   : > { %v1818_v31 = vsel %vm1815_vm6, %v1817_v12, %v1813_v9  ;;  %v1828_v29 = vsel %vm1827_vm7, %v2575_v20, %v1824_v10 }
 0x38d   : > { %v1835_v58 = vperm.slane %v1818_v31, 0  ;;  %v1833_v62 = vsel %vm1830_vm8, %v1832_v60, %v1828_v29 }
 0x38f   : > { %v1837_v4 = vmul.f32 %v1835_v58, %v3223_v28  ;;  %v1839_v26 = vmul.f32 %v1835_v58, %v3238_v18  ;;  %v1841_v41 = vmul.f32 %v1835_v58, %v3259_v52  ;;  %v1843_v17 = vmul.f32 %v1835_v58, %v3276_v48 }
 0x390   : > { %v1845_v42 = vmul.f32 %v1835_v58, %v3295_v30  ;;  %v1836_v28 = vperm.slane %v1833_v62, 0  ;;  %v1847_v18 = vmul.f32 %v1835_v58, %v3304_v49  ;;  %v1849_v52 = vmul.f32 %v1835_v58, %v3308_v46 }
 0x391   : > { %1853 = vst [vmem:[%s3409_s13] sm:$0xff] %v1837_v4  ;;  %v1851_v48 = vmul.f32 %v1835_v58, %v3316_v24 }
 0x392   : > { %1855 = vst [vmem:[%s3409_s13 + $0x10] sm:$0xff] %v1839_v26  ;;  %v1838_v30 = vmul.f32 %v1836_v28, %v3353_v15  ;;  %v1840_v0 = vmul.f32 %v1836_v28, %v3361_v56  ;;  %v1842_v49 = vmul.f32 %v1836_v28, %v3366_v59  ;;  %v1844_v46 = vmul.f32 %v1836_v28, %v3374_v2 }
 0x393   : > { %1857 = vst [vmem:[%s3409_s13 + $0x20] sm:$0xff] %v1841_v41  ;;  %v1846_v24 = vmul.f32 %v1836_v28, %v3379_v25  ;;  %v1848_v15 = vmul.f32 %v1836_v28, %v3384_v51  ;;  %v1850_v56 = vmul.f32 %v1836_v28, %v3386_v37  ;;  %v1852_v59 = vmul.f32 %v1836_v28, %v3395_v39 }
 0x394   : > { %1859 = vst [vmem:[%s3409_s13 + $0x30] sm:$0xff] %v1843_v17 }
 0x395   : > { %1861 = vst [vmem:[%s3409_s13 + $0x40] sm:$0xff] %v1845_v42 }
 0x396   : > { %1863 = vst [vmem:[%s3409_s13 + $0x50] sm:$0xff] %v1847_v18 }
 0x397   : > { %1865 = vst [vmem:[%s3409_s13 + $0x60] sm:$0xff] %v1849_v52 }
 0x398   : > { %1867 = vst [vmem:[%s3409_s13 + $0x70] sm:$0xff] %v1851_v48 }
 0x399   : > { %1854 = vst [vmem:[%s3409_s13 + $0x8] sm:$0xff] %v1838_v30 }
 0x39a   : > { %1856 = vst [vmem:[%s3409_s13 + $0x18] sm:$0xff] %v1840_v0 }
 0x39b   : > { %1858 = vst [vmem:[%s3409_s13 + $0x28] sm:$0xff] %v1842_v49 }
 0x39c   : > { %1860 = vst [vmem:[%s3409_s13 + $0x38] sm:$0xff] %v1844_v46 }
 0x39d   : > { %1862 = vst [vmem:[%s3409_s13 + $0x48] sm:$0xff] %v1846_v24 }
 0x39e   : > { %1864 = vst [vmem:[%s3409_s13 + $0x58] sm:$0xff] %v1848_v15 }
 0x39f   : > { %1866 = vst [vmem:[%s3409_s13 + $0x68] sm:$0xff] %v1850_v56 }
 0x3a0   : > { %1868 = vst [vmem:[%s3409_s13 + $0x78] sm:$0xff] %v1852_v59 }
 0x3a1   : > { %2663 = shalt.err (!%p2660_p10)
}
 0x3a2   : > { %s2713_s30 = smov 256   ;;  %s2714_s9 = smov 16  }
 0x3a3   : > { %2511 = dma.vmem_to_hbm [thread:$0]  (%p2817_p7), %s1883_s25, 2048, %s1885_s29, %s1870_s18, %s2713_s30, %s2713_s30, %s2714_s9  }
 0x3a4 PF: > { %s1899_s12 = sand.u32 1, %s2694_s21   ;;  %p3487_p12 = scmp.ge.s32.totalorder %s2706_s24, 2 }
 0x3a5   : > { %s1900_s13 = scalar_lea.sflag [#allocation4], %s1899_s12 }
 0x3a6   : > { %p2522_p13 = pnand %p3487_p12, %p2785_p6 }
 0x3a8   : > { %p2523_p0 = pneg %p2522_p13 }
 0x3aa   : > { %2689 = dma.done.wait (%p2523_p0), %s1900_s13, 2048  }
 0x3ab   : > { %2691 = vsyncadd (%p2523_p0), %s1900_s13, 4294965248  ;;  %s3488_s14 = sld [smem:[#allocation11_spill]]  ;;  %p20_p3 = scmp.ge.s32.totalorder %s2803_s11, 4  }
 0x3ac   : > { %s3489_s21 = smov %s2698_s22  ;;  %s3490_s22 = smov %s2702_s23 }
 0x3ad   : > { %s3492_s24 = smov %s2803_s11  ;;  %22 = sbr.rel (!%p20_p3) target bundleno = 8 (0x8), region = 93 }
 0x3b1   : > { %s3491_s23 = smov %s3488_s14 }
 0x3b2   :  { %1906 = vsyncpa [#allocation3], 1 }
 0x3b3   :  { %1908 = vsyncpa [#allocation3 + $0x1], 1 }
 0x3b4   :  { %1909 = vsyncpa [#allocation6], 1 }
 0x3b5   :  { %1910 = vsyncpa [#allocation4], 1 }
 0x3b6   :  { %1912 = vsyncpa [#allocation4 + $0x1], 1 }

</bundles_post_ra>
